<compile_context>
chip_gen: v7x
topology: tpu7x:2x2x1
jax: 0.10.0
libtpu: 0.0.40
codegen_flags: <defaults>
</compile_context>

<pallas_src>
import jax
import jax.numpy as jnp
from jax.experimental import pallas as pl
from jax.experimental.pallas import tpu as pltpu

# ---- "config" values implied by the module (small, synthetic) ----------------
VOCAB_SIZE = 64
EMBEDDING_DIM = 32
DECODER_HIDDEN_SIZE = 32
DECODER_LAYERS = 2
PADDING_IDX = 0

BATCH_PAD = 8                                      # sublane width
VOCAB_PAD = ((VOCAB_SIZE + 127) // 128) * 128      # lane-dense logits width
GATES = 3 * DECODER_HIDDEN_SIZE                    # fused gate lane dim [r|z|n]

assert EMBEDDING_DIM == DECODER_HIDDEN_SIZE, "stacked-layer weights assume E == H"

_R, _Z, _N = 0, 1, 2   # PyTorch GRU gate order: reset, update, new


# ------------------------------- Pallas kernel --------------------------------
def _make_decoder_kernel(T):
    H = DECODER_HIDDEN_SIZE
    L = DECODER_LAYERS
    V = VOCAB_SIZE
    G = GATES
    Bp = BATCH_PAD
    Vp = VOCAB_PAD
    f32 = jnp.float32

    def gru_cell(gi, hp, whh_l, bhn_b):
        # gi: (Bp, G) fused input gates, already containing b_ih (+ b_hh for r/z)
        # hp: (Bp, H) previous hidden; whh_l: (H, G) fused; bhn_b: (Bp, H) b_hh_n
        gh = jnp.dot(hp, whh_l, preferred_element_type=f32)          # (Bp, G)
        rz = jax.nn.sigmoid(gi[:, :2 * H] + gh[:, :2 * H])           # one EUP call
        r = rz[:, :H]
        z = rz[:, H:2 * H]
        n = jnp.tanh(gi[:, 2 * H:] + r * (gh[:, 2 * H:] + bhn_b))
        return (1.0 - z) * n + z * hp

    def kernel(ids_ref, emb_ref, h0_ref, wih_ref, whh_ref, bif_ref, bhn_ref,
               wout_ref, bout_ref, logits_ref, hn_ref, gi0_ref):
        # ---------------- prologue (runs once, off the serial chain) ----------------
        # Layer-0 input gates for every (t, b) in two small MXU passes:
        #   giE[v]  = emb[v] @ Wih0_fused + (b_ih0 + [b_hh0_r, b_hh0_z, 0])
        #   gi0     = onehot(ids) @ giE        (exact row gather via MXU)
        giE = (jnp.dot(emb_ref[...], wih_ref[0], preferred_element_type=f32)
               + bif_ref[0])                                          # (V, G)
        onehot = (ids_ref[...] ==
                  jax.lax.broadcasted_iota(jnp.int32, (T * Bp, V), 1)).astype(f32)
        gi0_ref[...] = jnp.dot(onehot, giE, preferred_element_type=f32)  # VMEM scratch

        # Hoisted loop invariants (JAX does not CSE broadcast_in_dim).
        bout_b = jnp.broadcast_to(bout_ref[...], (Bp, Vp))
        bif_b = [jnp.broadcast_to(bif_ref[l], (Bp, G)) for l in range(L)]   # l=0 unused
        bhn_b = [jnp.broadcast_to(bhn_ref[l], (Bp, H)) for l in range(L)]
        wout = wout_ref[...]                                          # (H, Vp)

        h = [h0_ref[l] for l in range(L)]                             # (Bp, H) each

        # -------- wavefront recurrence: wave w handles layer l at time t = w - l --------
        # layer l @ t needs layer l-1 @ t (computed in wave w-1) and its own h @ t-1
        # (also wave w-1), so all cells inside one wave are independent.
        for w in range(T + L - 1):
            updates = []
            for l in range(L):
                t = w - l
                if 0 <= t < T:
                    if l == 0:
                        # aligned 8-row VMEM load of the precomputed fused input gates
                        gi = gi0_ref[t * Bp:(t + 1) * Bp, :]
                    else:
                        gi = (jnp.dot(h[l - 1], wih_ref[l],
                                      preferred_element_type=f32) + bif_b[l])
                    updates.append((l, t, gru_cell(gi, h[l], whh_ref[l], bhn_b[l])))
            for l, t, hn in updates:          # commit after the wave (pre-wave reads above)
                h[l] = hn
                if l == L - 1:
                    # output projection folded into the loop: 128-lane-aligned,
                    # unmasked store; MXU has huge slack so this hides for free.
                    logits_ref[:, t * Vp:(t + 1) * Vp] = (
                        jnp.dot(hn, wout, preferred_element_type=f32) + bout_b)

        for l in range(L):
            hn_ref[l] = h[l]

    return kernel


# --------------------------- one-time parameter packing ------------------------
def pack_params(params):
    """Repack per-gate PyTorch-layout params into the fused kernel layout (run once)."""
    L, H = DECODER_LAYERS, DECODER_HIDDEN_SIZE
    V, E = params["embedding"].shape
    G, Vp = GATES, VOCAB_PAD

    wih_f = jnp.transpose(params["wih"], (0, 2, 1, 3)).reshape(L, E, G)   # [r|z|n] lanes
    whh_f = jnp.transpose(params["whh"], (0, 2, 1, 3)).reshape(L, H, G)
    bih_f = jnp.transpose(params["bih"], (0, 2, 1, 3)).reshape(L, 1, G)
    bhh_f = jnp.transpose(params["bhh"], (0, 2, 1, 3)).reshape(L, 1, G)
    # Fold b_hh for the r/z gates into the input-side bias; keep b_hh_n separate
    # (it must stay inside the r * (W_hn h + b_hn) term, matching PyTorch).
    bif = bih_f + bhh_f.at[:, :, 2 * H:].set(0.0)                         # (L, 1, G)
    bhn = params["bhh"][:, _N]                                            # (L, 1, H)

    wout_p = jnp.zeros((H, Vp), jnp.float32).at[:, :V].set(params["wout_t"])
    bout_p = jnp.zeros((1, Vp), jnp.float32).at[:, :V].set(params["bout"])

    return dict(embedding=params["embedding"], wih_f=wih_f, whh_f=whh_f,
                bif=bif, bhn=bhn, wout_p=wout_p, bout_p=bout_p)


# --------------------------------- wrapper ------------------------------------
def translation_decoder_forward(x_ids, h0, packed):
    """x_ids: (B, T) int32 tokens, h0: (L, B, H) f32. Returns (B, T, V), (L, B, H)."""
    B, T = x_ids.shape
    H, L = DECODER_HIDDEN_SIZE, DECODER_LAYERS
    V, E = VOCAB_SIZE, EMBEDDING_DIM
    G, Bp, Vp = GATES, BATCH_PAD, VOCAB_PAD

    # Only tiny wrapper-side prep remains: pad the 16 token ids and h0 rows.
    ids_p = (jnp.zeros((T, Bp), jnp.int32).at[:, :B].set(x_ids.T)
             .reshape(T * Bp, 1))                                     # time-major ids
    h0_p = jnp.zeros((L, Bp, H), jnp.float32).at[:, :B, :].set(h0)

    def full(shape):
        return pl.BlockSpec(shape, lambda i, _n=len(shape): (0,) * _n)

    grid_spec = pltpu.PrefetchScalarGridSpec(
        num_scalar_prefetch=0,
        grid=(1,),                                  # whole recurrence in one grid step
        in_specs=[
            full((T * Bp, 1)),      # token ids (time-major, batch padded)
            full((V, E)),           # embedding table (in-kernel lookup)
            full((L, Bp, H)),       # h0
            full((L, E, G)),        # fused W_ih  (gates packed along lanes)
            full((L, H, G)),        # fused W_hh
            full((L, 1, G)),        # b_ih + b_hh(r,z) fused
            full((L, 1, H)),        # b_hh(n)
            full((H, Vp)),          # W_out (lane-padded)
            full((1, Vp)),          # b_out (lane-padded)
        ],
        out_specs=[
            full((Bp, T * Vp)),     # logits, batch-first, lane-dense
            full((L, Bp, H)),       # hidden_n
        ],
        scratch_shapes=[pltpu.VMEM((T * Bp, G), jnp.float32)],   # precomputed layer-0 gates
    )

    logits_pad, hn_pad = pl.pallas_call(
        _make_decoder_kernel(T),
        out_shape=(jax.ShapeDtypeStruct((Bp, T * Vp), jnp.float32),
                   jax.ShapeDtypeStruct((L, Bp, H), jnp.float32)),
        grid_spec=grid_spec,
        compiler_params=pltpu.CompilerParams(dimension_semantics=("arbitrary",)),
    )(ids_p, packed["embedding"], h0_p, packed["wih_f"], packed["whh_f"],
      packed["bif"], packed["bhn"], packed["wout_p"], packed["bout_p"])

    # Cheap reshape + slices only — no transpose.
    logits = logits_pad.reshape(Bp, T, Vp)[:B, :, :V]
    hidden_n = hn_pad[:, :B, :]
    return logits, hidden_n


# ---------------------------- parameter init ----------------------------------
def init_params(key):
    V, E, H, L = VOCAB_SIZE, EMBEDDING_DIM, DECODER_HIDDEN_SIZE, DECODER_LAYERS
    ks = jax.random.split(key, 7)
    emb = jax.random.normal(ks[0], (V, E), jnp.float32)
    emb = emb.at[PADDING_IDX].set(0.0)             # nn.Embedding padding_idx row = 0
    bound = 1.0 / (H ** 0.5)

    def u(k, shape):
        return jax.random.uniform(k, shape, jnp.float32, -bound, bound)

    return dict(
        embedding=emb,
        wih=u(ks[1], (L, 3, E, H)),                # per-gate (r,z,n), stored (in, H)
        whh=u(ks[2], (L, 3, H, H)),
        bih=u(ks[3], (L, 3, 1, H)),
        bhh=u(ks[4], (L, 3, 1, H)),
        wout_t=u(ks[5], (H, V)),
        bout=u(ks[6], (1, V)),
    )


# ---------------------------- pure-JAX reference ------------------------------
def reference_forward(x_ids, h0, params):
    B, T = x_ids.shape
    H, L = DECODER_HIDDEN_SIZE, DECODER_LAYERS
    hi = jax.lax.Precision.HIGHEST
    emb = params["embedding"][x_ids]               # (B, T, E)
    h = [h0[l] for l in range(L)]
    outs = []
    for t in range(T):
        inp = emb[:, t]
        for l in range(L):
            gi = [jnp.dot(inp, params["wih"][l, g], precision=hi) + params["bih"][l, g]
                  for g in range(3)]
            gh = [jnp.dot(h[l], params["whh"][l, g], precision=hi) + params["bhh"][l, g]
                  for g in range(3)]
            r = jax.nn.sigmoid(gi[_R] + gh[_R])
            z = jax.nn.sigmoid(gi[_Z] + gh[_Z])
            n = jnp.tanh(gi[_N] + r * gh[_N])
            h[l] = (1.0 - z) * n + z * h[l]
            inp = h[l]
        outs.append(jnp.dot(inp, params["wout_t"], precision=hi) + params["bout"])
    return jnp.stack(outs, axis=1), jnp.stack(h, axis=0)


# ----------------------------------- main --------------------------------------
if __name__ == "__main__":
    key = jax.random.PRNGKey(0)
    k_param, k_x, k_h = jax.random.split(key, 3)

    B, T = 2, 8
    params = init_params(k_param)
    packed = pack_params(params)
    x_ids = jax.random.randint(k_x, (B, T), 0, VOCAB_SIZE, dtype=jnp.int32)
    h0 = jax.random.normal(k_h, (DECODER_LAYERS, B, DECODER_HIDDEN_SIZE), jnp.float32)

    logits, hidden_n = translation_decoder_forward(x_ids, h0, packed)
    jax.block_until_ready((logits, hidden_n))

    ref_logits, ref_hidden = reference_forward(x_ids, h0, params)
    assert logits.shape == (B, T, VOCAB_SIZE)
    assert hidden_n.shape == (DECODER_LAYERS, B, DECODER_HIDDEN_SIZE)
    assert jnp.allclose(logits, ref_logits, atol=1e-4, rtol=1e-4)
    assert jnp.allclose(hidden_n, ref_hidden, atol=1e-4, rtol=1e-4)

    print("KERNEL_OK")
</pallas_src>

<mosaic_0001>
module attributes {stable_mosaic.version = 11 : i64} {
  func.func @kernel(%arg0: i32, %arg1: memref<64x1xi32, #tpu.memory_space<vmem>>, %arg2: memref<64x32xf32, #tpu.memory_space<vmem>>, %arg3: memref<2x8x32xf32, #tpu.memory_space<vmem>>, %arg4: memref<2x32x96xf32, #tpu.memory_space<vmem>>, %arg5: memref<2x32x96xf32, #tpu.memory_space<vmem>>, %arg6: memref<2x1x96xf32, #tpu.memory_space<vmem>>, %arg7: memref<2x1x32xf32, #tpu.memory_space<vmem>>, %arg8: memref<32x128xf32, #tpu.memory_space<vmem>>, %arg9: memref<1x128xf32, #tpu.memory_space<vmem>>, %arg10: memref<8x1024xf32, #tpu.memory_space<vmem>>, %arg11: memref<2x8x32xf32, #tpu.memory_space<vmem>>, %arg12: memref<64x96xf32, #tpu.memory_space<vmem>>) attributes {dimension_semantics = [#tpu.dimension_semantics<arbitrary>], iteration_bounds = array<i64: 1>, scalar_prefetch = 0 : i64, scratch_operands = 1 : i64, tpu.core_type = #tpu.core_type<tc>, window_params = [{pipeline_mode = #tpu.pipeline_mode<synchronous>, transform_indices = @transform_0, window_bounds = array<i64: 64, 1>}, {pipeline_mode = #tpu.pipeline_mode<synchronous>, transform_indices = @transform_1, window_bounds = array<i64: 64, 32>}, {pipeline_mode = #tpu.pipeline_mode<synchronous>, transform_indices = @transform_2, window_bounds = array<i64: 2, 8, 32>}, {pipeline_mode = #tpu.pipeline_mode<synchronous>, transform_indices = @transform_3, window_bounds = array<i64: 2, 32, 96>}, {pipeline_mode = #tpu.pipeline_mode<synchronous>, transform_indices = @transform_4, window_bounds = array<i64: 2, 32, 96>}, {pipeline_mode = #tpu.pipeline_mode<synchronous>, transform_indices = @transform_5, window_bounds = array<i64: 2, 1, 96>}, {pipeline_mode = #tpu.pipeline_mode<synchronous>, transform_indices = @transform_6, window_bounds = array<i64: 2, 1, 32>}, {pipeline_mode = #tpu.pipeline_mode<synchronous>, transform_indices = @transform_7, window_bounds = array<i64: 32, 128>}, {pipeline_mode = #tpu.pipeline_mode<synchronous>, transform_indices = @transform_8, window_bounds = array<i64: 1, 128>}, {pipeline_mode = #tpu.pipeline_mode<synchronous>, transform_indices = @transform_9, window_bounds = array<i64: 8, 1024>}, {pipeline_mode = #tpu.pipeline_mode<synchronous>, transform_indices = @transform_10, window_bounds = array<i64: 2, 8, 32>}]} {
    %c0 = arith.constant 0 : index
    %c0_0 = arith.constant 0 : index
    %0 = vector.load %arg2[%c0, %c0_0] : memref<64x32xf32, #tpu.memory_space<vmem>>, vector<64x32xf32>
    %c0_1 = arith.constant 0 : index
    %c0_2 = arith.constant 0 : index
    %c0_3 = arith.constant 0 : index
    %1 = vector.load %arg4[%c0_1, %c0_2, %c0_3] : memref<2x32x96xf32, #tpu.memory_space<vmem>>, vector<1x32x96xf32>
    %2 = vector.shape_cast %1 : vector<1x32x96xf32> to vector<32x96xf32>
    %cst = arith.constant dense<0.000000e+00> : vector<64x96xf32>
    %3 = tpu.matmul %0, %2, %cst {dimension_numbers = #tpu.dot_dimension_numbers<[1], [0], [0], [1], [0, 0, 1, 1], [], []>} : vector<64x32xf32>, vector<32x96xf32>, vector<64x96xf32> -> vector<64x96xf32>
    %c0_4 = arith.constant 0 : index
    %c0_5 = arith.constant 0 : index
    %c0_6 = arith.constant 0 : index
    %4 = vector.load %arg6[%c0_4, %c0_5, %c0_6] : memref<2x1x96xf32, #tpu.memory_space<vmem>>, vector<1x1x96xf32>
    %5 = vector.shape_cast %4 : vector<1x1x96xf32> to vector<1x96xf32>
    %6 = vector.broadcast %5 : vector<1x96xf32> to vector<64x96xf32>
    %7 = arith.addf %3, %6 : vector<64x96xf32>
    %c0_7 = arith.constant 0 : index
    %c0_8 = arith.constant 0 : index
    %8 = vector.load %arg1[%c0_7, %c0_8] : memref<64x1xi32, #tpu.memory_space<vmem>>, vector<64x1xi32>
    %9 = tpu.iota {dimensions = array<i32: 1>} : vector<64x64xi32>
    %10 = vector.broadcast %8 : vector<64x1xi32> to vector<64x64xi32>
    %11 = arith.cmpi eq, %10, %9 : vector<64x64xi32>
    %12 = arith.extui %11 : vector<64x64xi1> to vector<64x64xi32>
    %13 = arith.sitofp %12 : vector<64x64xi32> to vector<64x64xf32>
    %cst_9 = arith.constant dense<0.000000e+00> : vector<64x96xf32>
    %14 = tpu.matmul %13, %7, %cst_9 {dimension_numbers = #tpu.dot_dimension_numbers<[1], [0], [0], [1], [0, 0, 1, 1], [], []>} : vector<64x64xf32>, vector<64x96xf32>, vector<64x96xf32> -> vector<64x96xf32>
    %c0_10 = arith.constant 0 : index
    %c0_11 = arith.constant 0 : index
    %15 = vector.load %arg12[%c0_10, %c0_11] : memref<64x96xf32, #tpu.memory_space<vmem>>, vector<64x96xf32>
    tpu.vector_store %arg12[%c0_10, %c0_11], %14 {strides = array<i32>} : memref<64x96xf32, #tpu.memory_space<vmem>>, vector<64x96xf32>,
    %c0_12 = arith.constant 0 : index
    %c0_13 = arith.constant 0 : index
    %16 = vector.load %arg9[%c0_12, %c0_13] : memref<1x128xf32, #tpu.memory_space<vmem>>, vector<1x128xf32>
    %17 = vector.shape_cast %16 : vector<1x128xf32> to vector<1x128xf32>
    %18 = vector.broadcast %17 : vector<1x128xf32> to vector<8x128xf32>
    %c1 = arith.constant 1 : index
    %c0_14 = arith.constant 0 : index
    %c0_15 = arith.constant 0 : index
    %19 = vector.load %arg6[%c1, %c0_14, %c0_15] : memref<2x1x96xf32, #tpu.memory_space<vmem>>, vector<1x1x96xf32>
    %20 = vector.shape_cast %19 : vector<1x1x96xf32> to vector<1x96xf32>
    %21 = vector.shape_cast %20 : vector<1x96xf32> to vector<1x96xf32>
    %22 = vector.broadcast %21 : vector<1x96xf32> to vector<8x96xf32>
    %c0_16 = arith.constant 0 : index
    %c0_17 = arith.constant 0 : index
    %c0_18 = arith.constant 0 : index
    %23 = vector.load %arg7[%c0_16, %c0_17, %c0_18] : memref<2x1x32xf32, #tpu.memory_space<vmem>>, vector<1x1x32xf32>
    %24 = vector.shape_cast %23 : vector<1x1x32xf32> to vector<1x32xf32>
    %25 = vector.shape_cast %24 : vector<1x32xf32> to vector<1x32xf32>
    %26 = vector.broadcast %25 : vector<1x32xf32> to vector<8x32xf32>
    %c1_19 = arith.constant 1 : index
    %c0_20 = arith.constant 0 : index
    %c0_21 = arith.constant 0 : index
    %27 = vector.load %arg7[%c1_19, %c0_20, %c0_21] : memref<2x1x32xf32, #tpu.memory_space<vmem>>, vector<1x1x32xf32>
    %28 = vector.shape_cast %27 : vector<1x1x32xf32> to vector<1x32xf32>
    %29 = vector.shape_cast %28 : vector<1x32xf32> to vector<1x32xf32>
    %30 = vector.broadcast %29 : vector<1x32xf32> to vector<8x32xf32>
    %c0_22 = arith.constant 0 : index
    %c0_23 = arith.constant 0 : index
    %31 = vector.load %arg8[%c0_22, %c0_23] : memref<32x128xf32, #tpu.memory_space<vmem>>, vector<32x128xf32>
    %c0_24 = arith.constant 0 : index
    %c0_25 = arith.constant 0 : index
    %c0_26 = arith.constant 0 : index
    %32 = vector.load %arg3[%c0_24, %c0_25, %c0_26] : memref<2x8x32xf32, #tpu.memory_space<vmem>>, vector<1x8x32xf32>
    %33 = vector.shape_cast %32 : vector<1x8x32xf32> to vector<8x32xf32>
    %c1_27 = arith.constant 1 : index
    %c0_28 = arith.constant 0 : index
    %c0_29 = arith.constant 0 : index
    %34 = vector.load %arg3[%c1_27, %c0_28, %c0_29] : memref<2x8x32xf32, #tpu.memory_space<vmem>>, vector<1x8x32xf32>
    %35 = vector.shape_cast %34 : vector<1x8x32xf32> to vector<8x32xf32>
    %c0_30 = arith.constant 0 : index
    %c0_31 = arith.constant 0 : index
    %36 = vector.load %arg12[%c0_30, %c0_31] : memref<64x96xf32, #tpu.memory_space<vmem>>, vector<8x96xf32>
    %c0_32 = arith.constant 0 : index
    %c0_33 = arith.constant 0 : index
    %c0_34 = arith.constant 0 : index
    %37 = vector.load %arg5[%c0_32, %c0_33, %c0_34] : memref<2x32x96xf32, #tpu.memory_space<vmem>>, vector<1x32x96xf32>
    %38 = vector.shape_cast %37 : vector<1x32x96xf32> to vector<32x96xf32>
    %cst_35 = arith.constant dense<0.000000e+00> : vector<8x96xf32>
    %39 = tpu.matmul %33, %38, %cst_35 {dimension_numbers = #tpu.dot_dimension_numbers<[1], [0], [0], [1], [0, 0, 1, 1], [], []>} : vector<8x32xf32>, vector<32x96xf32>, vector<8x96xf32> -> vector<8x96xf32>
    %40 = vector.extract_strided_slice %36 {offsets = [0, 0], sizes = [8, 64], strides = [1, 1]} : vector<8x96xf32> to vector<8x64xf32>
    %41 = vector.extract_strided_slice %39 {offsets = [0, 0], sizes = [8, 64], strides = [1, 1]} : vector<8x96xf32> to vector<8x64xf32>
    %42 = arith.addf %40, %41 : vector<8x64xf32>
    %43 = arith.negf %42 : vector<8x64xf32>
    %44 = math.exp %43 : vector<8x64xf32>
    %cst_36 = arith.constant 1.000000e+00 : f32
    %45 = vector.broadcast %cst_36 : f32 to vector<8x64xf32>
    %46 = arith.addf %45, %44 : vector<8x64xf32>
    %47 = arith.divf %45, %46 : vector<8x64xf32>
    %48 = vector.extract_strided_slice %47 {offsets = [0, 0], sizes = [8, 32], strides = [1, 1]} : vector<8x64xf32> to vector<8x32xf32>
    %49 = vector.extract_strided_slice %47 {offsets = [0, 32], sizes = [8, 32], strides = [1, 1]} : vector<8x64xf32> to vector<8x32xf32>
    %50 = vector.extract_strided_slice %36 {offsets = [0, 64], sizes = [8, 32], strides = [1, 1]} : vector<8x96xf32> to vector<8x32xf32>
    %51 = vector.extract_strided_slice %39 {offsets = [0, 64], sizes = [8, 32], strides = [1, 1]} : vector<8x96xf32> to vector<8x32xf32>
    %52 = arith.addf %51, %26 : vector<8x32xf32>
    %53 = arith.mulf %48, %52 : vector<8x32xf32>
    %54 = arith.addf %50, %53 : vector<8x32xf32>
    %55 = math.tanh %54 : vector<8x32xf32>
    %cst_37 = arith.constant 1.000000e+00 : f32
    %56 = vector.broadcast %cst_37 : f32 to vector<8x32xf32>
    %57 = arith.subf %56, %49 : vector<8x32xf32>
    %58 = arith.mulf %57, %55 : vector<8x32xf32>
    %59 = arith.mulf %49, %33 : vector<8x32xf32>
    %60 = arith.addf %58, %59 : vector<8x32xf32>
    %c8 = arith.constant 8 : index
    %c0_38 = arith.constant 0 : index
    %61 = vector.load %arg12[%c8, %c0_38] : memref<64x96xf32, #tpu.memory_space<vmem>>, vector<8x96xf32>
    %c0_39 = arith.constant 0 : index
    %c0_40 = arith.constant 0 : index
    %c0_41 = arith.constant 0 : index
    %62 = vector.load %arg5[%c0_39, %c0_40, %c0_41] : memref<2x32x96xf32, #tpu.memory_space<vmem>>, vector<1x32x96xf32>
    %63 = vector.shape_cast %62 : vector<1x32x96xf32> to vector<32x96xf32>
    %cst_42 = arith.constant dense<0.000000e+00> : vector<8x96xf32>
    %64 = tpu.matmul %60, %63, %cst_42 {dimension_numbers = #tpu.dot_dimension_numbers<[1], [0], [0], [1], [0, 0, 1, 1], [], []>} : vector<8x32xf32>, vector<32x96xf32>, vector<8x96xf32> -> vector<8x96xf32>
    %65 = vector.extract_strided_slice %61 {offsets = [0, 0], sizes = [8, 64], strides = [1, 1]} : vector<8x96xf32> to vector<8x64xf32>
    %66 = vector.extract_strided_slice %64 {offsets = [0, 0], sizes = [8, 64], strides = [1, 1]} : vector<8x96xf32> to vector<8x64xf32>
    %67 = arith.addf %65, %66 : vector<8x64xf32>
    %68 = arith.negf %67 : vector<8x64xf32>
    %69 = math.exp %68 : vector<8x64xf32>
    %cst_43 = arith.constant 1.000000e+00 : f32
    %70 = vector.broadcast %cst_43 : f32 to vector<8x64xf32>
    %71 = arith.addf %70, %69 : vector<8x64xf32>
    %72 = arith.divf %70, %71 : vector<8x64xf32>
    %73 = vector.extract_strided_slice %72 {offsets = [0, 0], sizes = [8, 32], strides = [1, 1]} : vector<8x64xf32> to vector<8x32xf32>
    %74 = vector.extract_strided_slice %72 {offsets = [0, 32], sizes = [8, 32], strides = [1, 1]} : vector<8x64xf32> to vector<8x32xf32>
    %75 = vector.extract_strided_slice %61 {offsets = [0, 64], sizes = [8, 32], strides = [1, 1]} : vector<8x96xf32> to vector<8x32xf32>
    %76 = vector.extract_strided_slice %64 {offsets = [0, 64], sizes = [8, 32], strides = [1, 1]} : vector<8x96xf32> to vector<8x32xf32>
    %77 = arith.addf %76, %26 : vector<8x32xf32>
    %78 = arith.mulf %73, %77 : vector<8x32xf32>
    %79 = arith.addf %75, %78 : vector<8x32xf32>
    %80 = math.tanh %79 : vector<8x32xf32>
    %cst_44 = arith.constant 1.000000e+00 : f32
    %81 = vector.broadcast %cst_44 : f32 to vector<8x32xf32>
    %82 = arith.subf %81, %74 : vector<8x32xf32>
    %83 = arith.mulf %82, %80 : vector<8x32xf32>
    %84 = arith.mulf %74, %60 : vector<8x32xf32>
    %85 = arith.addf %83, %84 : vector<8x32xf32>
    %c1_45 = arith.constant 1 : index
    %c0_46 = arith.constant 0 : index
    %c0_47 = arith.constant 0 : index
    %86 = vector.load %arg4[%c1_45, %c0_46, %c0_47] : memref<2x32x96xf32, #tpu.memory_space<vmem>>, vector<1x32x96xf32>
    %87 = vector.shape_cast %86 : vector<1x32x96xf32> to vector<32x96xf32>
    %cst_48 = arith.constant dense<0.000000e+00> : vector<8x96xf32>
    %88 = tpu.matmul %60, %87, %cst_48 {dimension_numbers = #tpu.dot_dimension_numbers<[1], [0], [0], [1], [0, 0, 1, 1], [], []>} : vector<8x32xf32>, vector<32x96xf32>, vector<8x96xf32> -> vector<8x96xf32>
    %89 = arith.addf %88, %22 : vector<8x96xf32>
    %c1_49 = arith.constant 1 : index
    %c0_50 = arith.constant 0 : index
    %c0_51 = arith.constant 0 : index
    %90 = vector.load %arg5[%c1_49, %c0_50, %c0_51] : memref<2x32x96xf32, #tpu.memory_space<vmem>>, vector<1x32x96xf32>
    %91 = vector.shape_cast %90 : vector<1x32x96xf32> to vector<32x96xf32>
    %cst_52 = arith.constant dense<0.000000e+00> : vector<8x96xf32>
    %92 = tpu.matmul %35, %91, %cst_52 {dimension_numbers = #tpu.dot_dimension_numbers<[1], [0], [0], [1], [0, 0, 1, 1], [], []>} : vector<8x32xf32>, vector<32x96xf32>, vector<8x96xf32> -> vector<8x96xf32>
    %93 = vector.extract_strided_slice %89 {offsets = [0, 0], sizes = [8, 64], strides = [1, 1]} : vector<8x96xf32> to vector<8x64xf32>
    %94 = vector.extract_strided_slice %92 {offsets = [0, 0], sizes = [8, 64], strides = [1, 1]} : vector<8x96xf32> to vector<8x64xf32>
    %95 = arith.addf %93, %94 : vector<8x64xf32>
    %96 = arith.negf %95 : vector<8x64xf32>
    %97 = math.exp %96 : vector<8x64xf32>
    %cst_53 = arith.constant 1.000000e+00 : f32
    %98 = vector.broadcast %cst_53 : f32 to vector<8x64xf32>
    %99 = arith.addf %98, %97 : vector<8x64xf32>
    %100 = arith.divf %98, %99 : vector<8x64xf32>
    %101 = vector.extract_strided_slice %100 {offsets = [0, 0], sizes = [8, 32], strides = [1, 1]} : vector<8x64xf32> to vector<8x32xf32>
    %102 = vector.extract_strided_slice %100 {offsets = [0, 32], sizes = [8, 32], strides = [1, 1]} : vector<8x64xf32> to vector<8x32xf32>
    %103 = vector.extract_strided_slice %89 {offsets = [0, 64], sizes = [8, 32], strides = [1, 1]} : vector<8x96xf32> to vector<8x32xf32>
    %104 = vector.extract_strided_slice %92 {offsets = [0, 64], sizes = [8, 32], strides = [1, 1]} : vector<8x96xf32> to vector<8x32xf32>
    %105 = arith.addf %104, %30 : vector<8x32xf32>
    %106 = arith.mulf %101, %105 : vector<8x32xf32>
    %107 = arith.addf %103, %106 : vector<8x32xf32>
    %108 = math.tanh %107 : vector<8x32xf32>
    %cst_54 = arith.constant 1.000000e+00 : f32
    %109 = vector.broadcast %cst_54 : f32 to vector<8x32xf32>
    %110 = arith.subf %109, %102 : vector<8x32xf32>
    %111 = arith.mulf %110, %108 : vector<8x32xf32>
    %112 = arith.mulf %102, %35 : vector<8x32xf32>
    %113 = arith.addf %111, %112 : vector<8x32xf32>
    %cst_55 = arith.constant dense<0.000000e+00> : vector<8x128xf32>
    %114 = tpu.matmul %113, %31, %cst_55 {dimension_numbers = #tpu.dot_dimension_numbers<[1], [0], [0], [1], [0, 0, 1, 1], [], []>} : vector<8x32xf32>, vector<32x128xf32>, vector<8x128xf32> -> vector<8x128xf32>
    %115 = arith.addf %114, %18 : vector<8x128xf32>
    %c0_56 = arith.constant 0 : index
    %c0_57 = arith.constant 0 : index
    %116 = vector.load %arg10[%c0_56, %c0_57] : memref<8x1024xf32, #tpu.memory_space<vmem>>, vector<8x128xf32>
    tpu.vector_store %arg10[%c0_56, %c0_57], %115 {strides = array<i32>} : memref<8x1024xf32, #tpu.memory_space<vmem>>, vector<8x128xf32>,
    %c16 = arith.constant 16 : index
    %c0_58 = arith.constant 0 : index
    %117 = vector.load %arg12[%c16, %c0_58] : memref<64x96xf32, #tpu.memory_space<vmem>>, vector<8x96xf32>
    %c0_59 = arith.constant 0 : index
    %c0_60 = arith.constant 0 : index
    %c0_61 = arith.constant 0 : index
    %118 = vector.load %arg5[%c0_59, %c0_60, %c0_61] : memref<2x32x96xf32, #tpu.memory_space<vmem>>, vector<1x32x96xf32>
    %119 = vector.shape_cast %118 : vector<1x32x96xf32> to vector<32x96xf32>
    %cst_62 = arith.constant dense<0.000000e+00> : vector<8x96xf32>
    %120 = tpu.matmul %85, %119, %cst_62 {dimension_numbers = #tpu.dot_dimension_numbers<[1], [0], [0], [1], [0, 0, 1, 1], [], []>} : vector<8x32xf32>, vector<32x96xf32>, vector<8x96xf32> -> vector<8x96xf32>
    %121 = vector.extract_strided_slice %117 {offsets = [0, 0], sizes = [8, 64], strides = [1, 1]} : vector<8x96xf32> to vector<8x64xf32>
    %122 = vector.extract_strided_slice %120 {offsets = [0, 0], sizes = [8, 64], strides = [1, 1]} : vector<8x96xf32> to vector<8x64xf32>
    %123 = arith.addf %121, %122 : vector<8x64xf32>
    %124 = arith.negf %123 : vector<8x64xf32>
    %125 = math.exp %124 : vector<8x64xf32>
    %cst_63 = arith.constant 1.000000e+00 : f32
    %126 = vector.broadcast %cst_63 : f32 to vector<8x64xf32>
    %127 = arith.addf %126, %125 : vector<8x64xf32>
    %128 = arith.divf %126, %127 : vector<8x64xf32>
    %129 = vector.extract_strided_slice %128 {offsets = [0, 0], sizes = [8, 32], strides = [1, 1]} : vector<8x64xf32> to vector<8x32xf32>
    %130 = vector.extract_strided_slice %128 {offsets = [0, 32], sizes = [8, 32], strides = [1, 1]} : vector<8x64xf32> to vector<8x32xf32>
    %131 = vector.extract_strided_slice %117 {offsets = [0, 64], sizes = [8, 32], strides = [1, 1]} : vector<8x96xf32> to vector<8x32xf32>
    %132 = vector.extract_strided_slice %120 {offsets = [0, 64], sizes = [8, 32], strides = [1, 1]} : vector<8x96xf32> to vector<8x32xf32>
    %133 = arith.addf %132, %26 : vector<8x32xf32>
    %134 = arith.mulf %129, %133 : vector<8x32xf32>
    %135 = arith.addf %131, %134 : vector<8x32xf32>
    %136 = math.tanh %135 : vector<8x32xf32>
    %cst_64 = arith.constant 1.000000e+00 : f32
    %137 = vector.broadcast %cst_64 : f32 to vector<8x32xf32>
    %138 = arith.subf %137, %130 : vector<8x32xf32>
    %139 = arith.mulf %138, %136 : vector<8x32xf32>
    %140 = arith.mulf %130, %85 : vector<8x32xf32>
    %141 = arith.addf %139, %140 : vector<8x32xf32>
    %c1_65 = arith.constant 1 : index
    %c0_66 = arith.constant 0 : index
    %c0_67 = arith.constant 0 : index
    %142 = vector.load %arg4[%c1_65, %c0_66, %c0_67] : memref<2x32x96xf32, #tpu.memory_space<vmem>>, vector<1x32x96xf32>
    %143 = vector.shape_cast %142 : vector<1x32x96xf32> to vector<32x96xf32>
    %cst_68 = arith.constant dense<0.000000e+00> : vector<8x96xf32>
    %144 = tpu.matmul %85, %143, %cst_68 {dimension_numbers = #tpu.dot_dimension_numbers<[1], [0], [0], [1], [0, 0, 1, 1], [], []>} : vector<8x32xf32>, vector<32x96xf32>, vector<8x96xf32> -> vector<8x96xf32>
    %145 = arith.addf %144, %22 : vector<8x96xf32>
    %c1_69 = arith.constant 1 : index
    %c0_70 = arith.constant 0 : index
    %c0_71 = arith.constant 0 : index
    %146 = vector.load %arg5[%c1_69, %c0_70, %c0_71] : memref<2x32x96xf32, #tpu.memory_space<vmem>>, vector<1x32x96xf32>
    %147 = vector.shape_cast %146 : vector<1x32x96xf32> to vector<32x96xf32>
    %cst_72 = arith.constant dense<0.000000e+00> : vector<8x96xf32>
    %148 = tpu.matmul %113, %147, %cst_72 {dimension_numbers = #tpu.dot_dimension_numbers<[1], [0], [0], [1], [0, 0, 1, 1], [], []>} : vector<8x32xf32>, vector<32x96xf32>, vector<8x96xf32> -> vector<8x96xf32>
    %149 = vector.extract_strided_slice %145 {offsets = [0, 0], sizes = [8, 64], strides = [1, 1]} : vector<8x96xf32> to vector<8x64xf32>
    %150 = vector.extract_strided_slice %148 {offsets = [0, 0], sizes = [8, 64], strides = [1, 1]} : vector<8x96xf32> to vector<8x64xf32>
    %151 = arith.addf %149, %150 : vector<8x64xf32>
    %152 = arith.negf %151 : vector<8x64xf32>
    %153 = math.exp %152 : vector<8x64xf32>
    %cst_73 = arith.constant 1.000000e+00 : f32
    %154 = vector.broadcast %cst_73 : f32 to vector<8x64xf32>
    %155 = arith.addf %154, %153 : vector<8x64xf32>
    %156 = arith.divf %154, %155 : vector<8x64xf32>
    %157 = vector.extract_strided_slice %156 {offsets = [0, 0], sizes = [8, 32], strides = [1, 1]} : vector<8x64xf32> to vector<8x32xf32>
    %158 = vector.extract_strided_slice %156 {offsets = [0, 32], sizes = [8, 32], strides = [1, 1]} : vector<8x64xf32> to vector<8x32xf32>
    %159 = vector.extract_strided_slice %145 {offsets = [0, 64], sizes = [8, 32], strides = [1, 1]} : vector<8x96xf32> to vector<8x32xf32>
    %160 = vector.extract_strided_slice %148 {offsets = [0, 64], sizes = [8, 32], strides = [1, 1]} : vector<8x96xf32> to vector<8x32xf32>
    %161 = arith.addf %160, %30 : vector<8x32xf32>
    %162 = arith.mulf %157, %161 : vector<8x32xf32>
    %163 = arith.addf %159, %162 : vector<8x32xf32>
    %164 = math.tanh %163 : vector<8x32xf32>
    %cst_74 = arith.constant 1.000000e+00 : f32
    %165 = vector.broadcast %cst_74 : f32 to vector<8x32xf32>
    %166 = arith.subf %165, %158 : vector<8x32xf32>
    %167 = arith.mulf %166, %164 : vector<8x32xf32>
    %168 = arith.mulf %158, %113 : vector<8x32xf32>
    %169 = arith.addf %167, %168 : vector<8x32xf32>
    %cst_75 = arith.constant dense<0.000000e+00> : vector<8x128xf32>
    %170 = tpu.matmul %169, %31, %cst_75 {dimension_numbers = #tpu.dot_dimension_numbers<[1], [0], [0], [1], [0, 0, 1, 1], [], []>} : vector<8x32xf32>, vector<32x128xf32>, vector<8x128xf32> -> vector<8x128xf32>
    %171 = arith.addf %170, %18 : vector<8x128xf32>
    %c0_76 = arith.constant 0 : index
    %c128 = arith.constant 128 : index
    %172 = vector.load %arg10[%c0_76, %c128] : memref<8x1024xf32, #tpu.memory_space<vmem>>, vector<8x128xf32>
    tpu.vector_store %arg10[%c0_76, %c128], %171 {strides = array<i32>} : memref<8x1024xf32, #tpu.memory_space<vmem>>, vector<8x128xf32>,
    %c24 = arith.constant 24 : index
    %c0_77 = arith.constant 0 : index
    %173 = vector.load %arg12[%c24, %c0_77] : memref<64x96xf32, #tpu.memory_space<vmem>>, vector<8x96xf32>
    %c0_78 = arith.constant 0 : index
    %c0_79 = arith.constant 0 : index
    %c0_80 = arith.constant 0 : index
    %174 = vector.load %arg5[%c0_78, %c0_79, %c0_80] : memref<2x32x96xf32, #tpu.memory_space<vmem>>, vector<1x32x96xf32>
    %175 = vector.shape_cast %174 : vector<1x32x96xf32> to vector<32x96xf32>
    %cst_81 = arith.constant dense<0.000000e+00> : vector<8x96xf32>
    %176 = tpu.matmul %141, %175, %cst_81 {dimension_numbers = #tpu.dot_dimension_numbers<[1], [0], [0], [1], [0, 0, 1, 1], [], []>} : vector<8x32xf32>, vector<32x96xf32>, vector<8x96xf32> -> vector<8x96xf32>
    %177 = vector.extract_strided_slice %173 {offsets = [0, 0], sizes = [8, 64], strides = [1, 1]} : vector<8x96xf32> to vector<8x64xf32>
    %178 = vector.extract_strided_slice %176 {offsets = [0, 0], sizes = [8, 64], strides = [1, 1]} : vector<8x96xf32> to vector<8x64xf32>
    %179 = arith.addf %177, %178 : vector<8x64xf32>
    %180 = arith.negf %179 : vector<8x64xf32>
    %181 = math.exp %180 : vector<8x64xf32>
    %cst_82 = arith.constant 1.000000e+00 : f32
    %182 = vector.broadcast %cst_82 : f32 to vector<8x64xf32>
    %183 = arith.addf %182, %181 : vector<8x64xf32>
    %184 = arith.divf %182, %183 : vector<8x64xf32>
    %185 = vector.extract_strided_slice %184 {offsets = [0, 0], sizes = [8, 32], strides = [1, 1]} : vector<8x64xf32> to vector<8x32xf32>
    %186 = vector.extract_strided_slice %184 {offsets = [0, 32], sizes = [8, 32], strides = [1, 1]} : vector<8x64xf32> to vector<8x32xf32>
    %187 = vector.extract_strided_slice %173 {offsets = [0, 64], sizes = [8, 32], strides = [1, 1]} : vector<8x96xf32> to vector<8x32xf32>
    %188 = vector.extract_strided_slice %176 {offsets = [0, 64], sizes = [8, 32], strides = [1, 1]} : vector<8x96xf32> to vector<8x32xf32>
    %189 = arith.addf %188, %26 : vector<8x32xf32>
    %190 = arith.mulf %185, %189 : vector<8x32xf32>
    %191 = arith.addf %187, %190 : vector<8x32xf32>
    %192 = math.tanh %191 : vector<8x32xf32>
    %cst_83 = arith.constant 1.000000e+00 : f32
    %193 = vector.broadcast %cst_83 : f32 to vector<8x32xf32>
    %194 = arith.subf %193, %186 : vector<8x32xf32>
    %195 = arith.mulf %194, %192 : vector<8x32xf32>
    %196 = arith.mulf %186, %141 : vector<8x32xf32>
    %197 = arith.addf %195, %196 : vector<8x32xf32>
    %c1_84 = arith.constant 1 : index
    %c0_85 = arith.constant 0 : index
    %c0_86 = arith.constant 0 : index
    %198 = vector.load %arg4[%c1_84, %c0_85, %c0_86] : memref<2x32x96xf32, #tpu.memory_space<vmem>>, vector<1x32x96xf32>
    %199 = vector.shape_cast %198 : vector<1x32x96xf32> to vector<32x96xf32>
    %cst_87 = arith.constant dense<0.000000e+00> : vector<8x96xf32>
    %200 = tpu.matmul %141, %199, %cst_87 {dimension_numbers = #tpu.dot_dimension_numbers<[1], [0], [0], [1], [0, 0, 1, 1], [], []>} : vector<8x32xf32>, vector<32x96xf32>, vector<8x96xf32> -> vector<8x96xf32>
    %201 = arith.addf %200, %22 : vector<8x96xf32>
    %c1_88 = arith.constant 1 : index
    %c0_89 = arith.constant 0 : index
    %c0_90 = arith.constant 0 : index
    %202 = vector.load %arg5[%c1_88, %c0_89, %c0_90] : memref<2x32x96xf32, #tpu.memory_space<vmem>>, vector<1x32x96xf32>
    %203 = vector.shape_cast %202 : vector<1x32x96xf32> to vector<32x96xf32>
    %cst_91 = arith.constant dense<0.000000e+00> : vector<8x96xf32>
    %204 = tpu.matmul %169, %203, %cst_91 {dimension_numbers = #tpu.dot_dimension_numbers<[1], [0], [0], [1], [0, 0, 1, 1], [], []>} : vector<8x32xf32>, vector<32x96xf32>, vector<8x96xf32> -> vector<8x96xf32>
    %205 = vector.extract_strided_slice %201 {offsets = [0, 0], sizes = [8, 64], strides = [1, 1]} : vector<8x96xf32> to vector<8x64xf32>
    %206 = vector.extract_strided_slice %204 {offsets = [0, 0], sizes = [8, 64], strides = [1, 1]} : vector<8x96xf32> to vector<8x64xf32>
    %207 = arith.addf %205, %206 : vector<8x64xf32>
    %208 = arith.negf %207 : vector<8x64xf32>
    %209 = math.exp %208 : vector<8x64xf32>
    %cst_92 = arith.constant 1.000000e+00 : f32
    %210 = vector.broadcast %cst_92 : f32 to vector<8x64xf32>
    %211 = arith.addf %210, %209 : vector<8x64xf32>
    %212 = arith.divf %210, %211 : vector<8x64xf32>
    %213 = vector.extract_strided_slice %212 {offsets = [0, 0], sizes = [8, 32], strides = [1, 1]} : vector<8x64xf32> to vector<8x32xf32>
    %214 = vector.extract_strided_slice %212 {offsets = [0, 32], sizes = [8, 32], strides = [1, 1]} : vector<8x64xf32> to vector<8x32xf32>
    %215 = vector.extract_strided_slice %201 {offsets = [0, 64], sizes = [8, 32], strides = [1, 1]} : vector<8x96xf32> to vector<8x32xf32>
    %216 = vector.extract_strided_slice %204 {offsets = [0, 64], sizes = [8, 32], strides = [1, 1]} : vector<8x96xf32> to vector<8x32xf32>
    %217 = arith.addf %216, %30 : vector<8x32xf32>
    %218 = arith.mulf %213, %217 : vector<8x32xf32>
    %219 = arith.addf %215, %218 : vector<8x32xf32>
    %220 = math.tanh %219 : vector<8x32xf32>
    %cst_93 = arith.constant 1.000000e+00 : f32
    %221 = vector.broadcast %cst_93 : f32 to vector<8x32xf32>
    %222 = arith.subf %221, %214 : vector<8x32xf32>
    %223 = arith.mulf %222, %220 : vector<8x32xf32>
    %224 = arith.mulf %214, %169 : vector<8x32xf32>
    %225 = arith.addf %223, %224 : vector<8x32xf32>
    %cst_94 = arith.constant dense<0.000000e+00> : vector<8x128xf32>
    %226 = tpu.matmul %225, %31, %cst_94 {dimension_numbers = #tpu.dot_dimension_numbers<[1], [0], [0], [1], [0, 0, 1, 1], [], []>} : vector<8x32xf32>, vector<32x128xf32>, vector<8x128xf32> -> vector<8x128xf32>
    %227 = arith.addf %226, %18 : vector<8x128xf32>
    %c0_95 = arith.constant 0 : index
    %c256 = arith.constant 256 : index
    %228 = vector.load %arg10[%c0_95, %c256] : memref<8x1024xf32, #tpu.memory_space<vmem>>, vector<8x128xf32>
    tpu.vector_store %arg10[%c0_95, %c256], %227 {strides = array<i32>} : memref<8x1024xf32, #tpu.memory_space<vmem>>, vector<8x128xf32>,
    %c32 = arith.constant 32 : index
    %c0_96 = arith.constant 0 : index
    %229 = vector.load %arg12[%c32, %c0_96] : memref<64x96xf32, #tpu.memory_space<vmem>>, vector<8x96xf32>
    %c0_97 = arith.constant 0 : index
    %c0_98 = arith.constant 0 : index
    %c0_99 = arith.constant 0 : index
    %230 = vector.load %arg5[%c0_97, %c0_98, %c0_99] : memref<2x32x96xf32, #tpu.memory_space<vmem>>, vector<1x32x96xf32>
    %231 = vector.shape_cast %230 : vector<1x32x96xf32> to vector<32x96xf32>
    %cst_100 = arith.constant dense<0.000000e+00> : vector<8x96xf32>
    %232 = tpu.matmul %197, %231, %cst_100 {dimension_numbers = #tpu.dot_dimension_numbers<[1], [0], [0], [1], [0, 0, 1, 1], [], []>} : vector<8x32xf32>, vector<32x96xf32>, vector<8x96xf32> -> vector<8x96xf32>
    %233 = vector.extract_strided_slice %229 {offsets = [0, 0], sizes = [8, 64], strides = [1, 1]} : vector<8x96xf32> to vector<8x64xf32>
    %234 = vector.extract_strided_slice %232 {offsets = [0, 0], sizes = [8, 64], strides = [1, 1]} : vector<8x96xf32> to vector<8x64xf32>
    %235 = arith.addf %233, %234 : vector<8x64xf32>
    %236 = arith.negf %235 : vector<8x64xf32>
    %237 = math.exp %236 : vector<8x64xf32>
    %cst_101 = arith.constant 1.000000e+00 : f32
    %238 = vector.broadcast %cst_101 : f32 to vector<8x64xf32>
    %239 = arith.addf %238, %237 : vector<8x64xf32>
    %240 = arith.divf %238, %239 : vector<8x64xf32>
    %241 = vector.extract_strided_slice %240 {offsets = [0, 0], sizes = [8, 32], strides = [1, 1]} : vector<8x64xf32> to vector<8x32xf32>
    %242 = vector.extract_strided_slice %240 {offsets = [0, 32], sizes = [8, 32], strides = [1, 1]} : vector<8x64xf32> to vector<8x32xf32>
    %243 = vector.extract_strided_slice %229 {offsets = [0, 64], sizes = [8, 32], strides = [1, 1]} : vector<8x96xf32> to vector<8x32xf32>
    %244 = vector.extract_strided_slice %232 {offsets = [0, 64], sizes = [8, 32], strides = [1, 1]} : vector<8x96xf32> to vector<8x32xf32>
    %245 = arith.addf %244, %26 : vector<8x32xf32>
    %246 = arith.mulf %241, %245 : vector<8x32xf32>
    %247 = arith.addf %243, %246 : vector<8x32xf32>
    %248 = math.tanh %247 : vector<8x32xf32>
    %cst_102 = arith.constant 1.000000e+00 : f32
    %249 = vector.broadcast %cst_102 : f32 to vector<8x32xf32>
    %250 = arith.subf %249, %242 : vector<8x32xf32>
    %251 = arith.mulf %250, %248 : vector<8x32xf32>
    %252 = arith.mulf %242, %197 : vector<8x32xf32>
    %253 = arith.addf %251, %252 : vector<8x32xf32>
    %c1_103 = arith.constant 1 : index
    %c0_104 = arith.constant 0 : index
    %c0_105 = arith.constant 0 : index
    %254 = vector.load %arg4[%c1_103, %c0_104, %c0_105] : memref<2x32x96xf32, #tpu.memory_space<vmem>>, vector<1x32x96xf32>
    %255 = vector.shape_cast %254 : vector<1x32x96xf32> to vector<32x96xf32>
    %cst_106 = arith.constant dense<0.000000e+00> : vector<8x96xf32>
    %256 = tpu.matmul %197, %255, %cst_106 {dimension_numbers = #tpu.dot_dimension_numbers<[1], [0], [0], [1], [0, 0, 1, 1], [], []>} : vector<8x32xf32>, vector<32x96xf32>, vector<8x96xf32> -> vector<8x96xf32>
    %257 = arith.addf %256, %22 : vector<8x96xf32>
    %c1_107 = arith.constant 1 : index
    %c0_108 = arith.constant 0 : index
    %c0_109 = arith.constant 0 : index
    %258 = vector.load %arg5[%c1_107, %c0_108, %c0_109] : memref<2x32x96xf32, #tpu.memory_space<vmem>>, vector<1x32x96xf32>
    %259 = vector.shape_cast %258 : vector<1x32x96xf32> to vector<32x96xf32>
    %cst_110 = arith.constant dense<0.000000e+00> : vector<8x96xf32>
    %260 = tpu.matmul %225, %259, %cst_110 {dimension_numbers = #tpu.dot_dimension_numbers<[1], [0], [0], [1], [0, 0, 1, 1], [], []>} : vector<8x32xf32>, vector<32x96xf32>, vector<8x96xf32> -> vector<8x96xf32>
    %261 = vector.extract_strided_slice %257 {offsets = [0, 0], sizes = [8, 64], strides = [1, 1]} : vector<8x96xf32> to vector<8x64xf32>
    %262 = vector.extract_strided_slice %260 {offsets = [0, 0], sizes = [8, 64], strides = [1, 1]} : vector<8x96xf32> to vector<8x64xf32>
    %263 = arith.addf %261, %262 : vector<8x64xf32>
    %264 = arith.negf %263 : vector<8x64xf32>
    %265 = math.exp %264 : vector<8x64xf32>
    %cst_111 = arith.constant 1.000000e+00 : f32
    %266 = vector.broadcast %cst_111 : f32 to vector<8x64xf32>
    %267 = arith.addf %266, %265 : vector<8x64xf32>
    %268 = arith.divf %266, %267 : vector<8x64xf32>
    %269 = vector.extract_strided_slice %268 {offsets = [0, 0], sizes = [8, 32], strides = [1, 1]} : vector<8x64xf32> to vector<8x32xf32>
    %270 = vector.extract_strided_slice %268 {offsets = [0, 32], sizes = [8, 32], strides = [1, 1]} : vector<8x64xf32> to vector<8x32xf32>
    %271 = vector.extract_strided_slice %257 {offsets = [0, 64], sizes = [8, 32], strides = [1, 1]} : vector<8x96xf32> to vector<8x32xf32>
    %272 = vector.extract_strided_slice %260 {offsets = [0, 64], sizes = [8, 32], strides = [1, 1]} : vector<8x96xf32> to vector<8x32xf32>
    %273 = arith.addf %272, %30 : vector<8x32xf32>
    %274 = arith.mulf %269, %273 : vector<8x32xf32>
    %275 = arith.addf %271, %274 : vector<8x32xf32>
    %276 = math.tanh %275 : vector<8x32xf32>
    %cst_112 = arith.constant 1.000000e+00 : f32
    %277 = vector.broadcast %cst_112 : f32 to vector<8x32xf32>
    %278 = arith.subf %277, %270 : vector<8x32xf32>
    %279 = arith.mulf %278, %276 : vector<8x32xf32>
    %280 = arith.mulf %270, %225 : vector<8x32xf32>
    %281 = arith.addf %279, %280 : vector<8x32xf32>
    %cst_113 = arith.constant dense<0.000000e+00> : vector<8x128xf32>
    %282 = tpu.matmul %281, %31, %cst_113 {dimension_numbers = #tpu.dot_dimension_numbers<[1], [0], [0], [1], [0, 0, 1, 1], [], []>} : vector<8x32xf32>, vector<32x128xf32>, vector<8x128xf32> -> vector<8x128xf32>
    %283 = arith.addf %282, %18 : vector<8x128xf32>
    %c0_114 = arith.constant 0 : index
    %c384 = arith.constant 384 : index
    %284 = vector.load %arg10[%c0_114, %c384] : memref<8x1024xf32, #tpu.memory_space<vmem>>, vector<8x128xf32>
    tpu.vector_store %arg10[%c0_114, %c384], %283 {strides = array<i32>} : memref<8x1024xf32, #tpu.memory_space<vmem>>, vector<8x128xf32>,
    %c40 = arith.constant 40 : index
    %c0_115 = arith.constant 0 : index
    %285 = vector.load %arg12[%c40, %c0_115] : memref<64x96xf32, #tpu.memory_space<vmem>>, vector<8x96xf32>
    %c0_116 = arith.constant 0 : index
    %c0_117 = arith.constant 0 : index
    %c0_118 = arith.constant 0 : index
    %286 = vector.load %arg5[%c0_116, %c0_117, %c0_118] : memref<2x32x96xf32, #tpu.memory_space<vmem>>, vector<1x32x96xf32>
    %287 = vector.shape_cast %286 : vector<1x32x96xf32> to vector<32x96xf32>
    %cst_119 = arith.constant dense<0.000000e+00> : vector<8x96xf32>
    %288 = tpu.matmul %253, %287, %cst_119 {dimension_numbers = #tpu.dot_dimension_numbers<[1], [0], [0], [1], [0, 0, 1, 1], [], []>} : vector<8x32xf32>, vector<32x96xf32>, vector<8x96xf32> -> vector<8x96xf32>
    %289 = vector.extract_strided_slice %285 {offsets = [0, 0], sizes = [8, 64], strides = [1, 1]} : vector<8x96xf32> to vector<8x64xf32>
    %290 = vector.extract_strided_slice %288 {offsets = [0, 0], sizes = [8, 64], strides = [1, 1]} : vector<8x96xf32> to vector<8x64xf32>
    %291 = arith.addf %289, %290 : vector<8x64xf32>
    %292 = arith.negf %291 : vector<8x64xf32>
    %293 = math.exp %292 : vector<8x64xf32>
    %cst_120 = arith.constant 1.000000e+00 : f32
    %294 = vector.broadcast %cst_120 : f32 to vector<8x64xf32>
    %295 = arith.addf %294, %293 : vector<8x64xf32>
    %296 = arith.divf %294, %295 : vector<8x64xf32>
    %297 = vector.extract_strided_slice %296 {offsets = [0, 0], sizes = [8, 32], strides = [1, 1]} : vector<8x64xf32> to vector<8x32xf32>
    %298 = vector.extract_strided_slice %296 {offsets = [0, 32], sizes = [8, 32], strides = [1, 1]} : vector<8x64xf32> to vector<8x32xf32>
    %299 = vector.extract_strided_slice %285 {offsets = [0, 64], sizes = [8, 32], strides = [1, 1]} : vector<8x96xf32> to vector<8x32xf32>
    %300 = vector.extract_strided_slice %288 {offsets = [0, 64], sizes = [8, 32], strides = [1, 1]} : vector<8x96xf32> to vector<8x32xf32>
    %301 = arith.addf %300, %26 : vector<8x32xf32>
    %302 = arith.mulf %297, %301 : vector<8x32xf32>
    %303 = arith.addf %299, %302 : vector<8x32xf32>
    %304 = math.tanh %303 : vector<8x32xf32>
    %cst_121 = arith.constant 1.000000e+00 : f32
    %305 = vector.broadcast %cst_121 : f32 to vector<8x32xf32>
    %306 = arith.subf %305, %298 : vector<8x32xf32>
    %307 = arith.mulf %306, %304 : vector<8x32xf32>
    %308 = arith.mulf %298, %253 : vector<8x32xf32>
    %309 = arith.addf %307, %308 : vector<8x32xf32>
    %c1_122 = arith.constant 1 : index
    %c0_123 = arith.constant 0 : index
    %c0_124 = arith.constant 0 : index
    %310 = vector.load %arg4[%c1_122, %c0_123, %c0_124] : memref<2x32x96xf32, #tpu.memory_space<vmem>>, vector<1x32x96xf32>
    %311 = vector.shape_cast %310 : vector<1x32x96xf32> to vector<32x96xf32>
    %cst_125 = arith.constant dense<0.000000e+00> : vector<8x96xf32>
    %312 = tpu.matmul %253, %311, %cst_125 {dimension_numbers = #tpu.dot_dimension_numbers<[1], [0], [0], [1], [0, 0, 1, 1], [], []>} : vector<8x32xf32>, vector<32x96xf32>, vector<8x96xf32> -> vector<8x96xf32>
    %313 = arith.addf %312, %22 : vector<8x96xf32>
    %c1_126 = arith.constant 1 : index
    %c0_127 = arith.constant 0 : index
    %c0_128 = arith.constant 0 : index
    %314 = vector.load %arg5[%c1_126, %c0_127, %c0_128] : memref<2x32x96xf32, #tpu.memory_space<vmem>>, vector<1x32x96xf32>
    %315 = vector.shape_cast %314 : vector<1x32x96xf32> to vector<32x96xf32>
    %cst_129 = arith.constant dense<0.000000e+00> : vector<8x96xf32>
    %316 = tpu.matmul %281, %315, %cst_129 {dimension_numbers = #tpu.dot_dimension_numbers<[1], [0], [0], [1], [0, 0, 1, 1], [], []>} : vector<8x32xf32>, vector<32x96xf32>, vector<8x96xf32> -> vector<8x96xf32>
    %317 = vector.extract_strided_slice %313 {offsets = [0, 0], sizes = [8, 64], strides = [1, 1]} : vector<8x96xf32> to vector<8x64xf32>
    %318 = vector.extract_strided_slice %316 {offsets = [0, 0], sizes = [8, 64], strides = [1, 1]} : vector<8x96xf32> to vector<8x64xf32>
    %319 = arith.addf %317, %318 : vector<8x64xf32>
    %320 = arith.negf %319 : vector<8x64xf32>
    %321 = math.exp %320 : vector<8x64xf32>
    %cst_130 = arith.constant 1.000000e+00 : f32
    %322 = vector.broadcast %cst_130 : f32 to vector<8x64xf32>
    %323 = arith.addf %322, %321 : vector<8x64xf32>
    %324 = arith.divf %322, %323 : vector<8x64xf32>
    %325 = vector.extract_strided_slice %324 {offsets = [0, 0], sizes = [8, 32], strides = [1, 1]} : vector<8x64xf32> to vector<8x32xf32>
    %326 = vector.extract_strided_slice %324 {offsets = [0, 32], sizes = [8, 32], strides = [1, 1]} : vector<8x64xf32> to vector<8x32xf32>
    %327 = vector.extract_strided_slice %313 {offsets = [0, 64], sizes = [8, 32], strides = [1, 1]} : vector<8x96xf32> to vector<8x32xf32>
    %328 = vector.extract_strided_slice %316 {offsets = [0, 64], sizes = [8, 32], strides = [1, 1]} : vector<8x96xf32> to vector<8x32xf32>
    %329 = arith.addf %328, %30 : vector<8x32xf32>
    %330 = arith.mulf %325, %329 : vector<8x32xf32>
    %331 = arith.addf %327, %330 : vector<8x32xf32>
    %332 = math.tanh %331 : vector<8x32xf32>
    %cst_131 = arith.constant 1.000000e+00 : f32
    %333 = vector.broadcast %cst_131 : f32 to vector<8x32xf32>
    %334 = arith.subf %333, %326 : vector<8x32xf32>
    %335 = arith.mulf %334, %332 : vector<8x32xf32>
    %336 = arith.mulf %326, %281 : vector<8x32xf32>
    %337 = arith.addf %335, %336 : vector<8x32xf32>
    %cst_132 = arith.constant dense<0.000000e+00> : vector<8x128xf32>
    %338 = tpu.matmul %337, %31, %cst_132 {dimension_numbers = #tpu.dot_dimension_numbers<[1], [0], [0], [1], [0, 0, 1, 1], [], []>} : vector<8x32xf32>, vector<32x128xf32>, vector<8x128xf32> -> vector<8x128xf32>
    %339 = arith.addf %338, %18 : vector<8x128xf32>
    %c0_133 = arith.constant 0 : index
    %c512 = arith.constant 512 : index
    %340 = vector.load %arg10[%c0_133, %c512] : memref<8x1024xf32, #tpu.memory_space<vmem>>, vector<8x128xf32>
    tpu.vector_store %arg10[%c0_133, %c512], %339 {strides = array<i32>} : memref<8x1024xf32, #tpu.memory_space<vmem>>, vector<8x128xf32>,
    %c48 = arith.constant 48 : index
    %c0_134 = arith.constant 0 : index
    %341 = vector.load %arg12[%c48, %c0_134] : memref<64x96xf32, #tpu.memory_space<vmem>>, vector<8x96xf32>
    %c0_135 = arith.constant 0 : index
    %c0_136 = arith.constant 0 : index
    %c0_137 = arith.constant 0 : index
    %342 = vector.load %arg5[%c0_135, %c0_136, %c0_137] : memref<2x32x96xf32, #tpu.memory_space<vmem>>, vector<1x32x96xf32>
    %343 = vector.shape_cast %342 : vector<1x32x96xf32> to vector<32x96xf32>
    %cst_138 = arith.constant dense<0.000000e+00> : vector<8x96xf32>
    %344 = tpu.matmul %309, %343, %cst_138 {dimension_numbers = #tpu.dot_dimension_numbers<[1], [0], [0], [1], [0, 0, 1, 1], [], []>} : vector<8x32xf32>, vector<32x96xf32>, vector<8x96xf32> -> vector<8x96xf32>
    %345 = vector.extract_strided_slice %341 {offsets = [0, 0], sizes = [8, 64], strides = [1, 1]} : vector<8x96xf32> to vector<8x64xf32>
    %346 = vector.extract_strided_slice %344 {offsets = [0, 0], sizes = [8, 64], strides = [1, 1]} : vector<8x96xf32> to vector<8x64xf32>
    %347 = arith.addf %345, %346 : vector<8x64xf32>
    %348 = arith.negf %347 : vector<8x64xf32>
    %349 = math.exp %348 : vector<8x64xf32>
    %cst_139 = arith.constant 1.000000e+00 : f32
    %350 = vector.broadcast %cst_139 : f32 to vector<8x64xf32>
    %351 = arith.addf %350, %349 : vector<8x64xf32>
    %352 = arith.divf %350, %351 : vector<8x64xf32>
    %353 = vector.extract_strided_slice %352 {offsets = [0, 0], sizes = [8, 32], strides = [1, 1]} : vector<8x64xf32> to vector<8x32xf32>
    %354 = vector.extract_strided_slice %352 {offsets = [0, 32], sizes = [8, 32], strides = [1, 1]} : vector<8x64xf32> to vector<8x32xf32>
    %355 = vector.extract_strided_slice %341 {offsets = [0, 64], sizes = [8, 32], strides = [1, 1]} : vector<8x96xf32> to vector<8x32xf32>
    %356 = vector.extract_strided_slice %344 {offsets = [0, 64], sizes = [8, 32], strides = [1, 1]} : vector<8x96xf32> to vector<8x32xf32>
    %357 = arith.addf %356, %26 : vector<8x32xf32>
    %358 = arith.mulf %353, %357 : vector<8x32xf32>
    %359 = arith.addf %355, %358 : vector<8x32xf32>
    %360 = math.tanh %359 : vector<8x32xf32>
    %cst_140 = arith.constant 1.000000e+00 : f32
    %361 = vector.broadcast %cst_140 : f32 to vector<8x32xf32>
    %362 = arith.subf %361, %354 : vector<8x32xf32>
    %363 = arith.mulf %362, %360 : vector<8x32xf32>
    %364 = arith.mulf %354, %309 : vector<8x32xf32>
    %365 = arith.addf %363, %364 : vector<8x32xf32>
    %c1_141 = arith.constant 1 : index
    %c0_142 = arith.constant 0 : index
    %c0_143 = arith.constant 0 : index
    %366 = vector.load %arg4[%c1_141, %c0_142, %c0_143] : memref<2x32x96xf32, #tpu.memory_space<vmem>>, vector<1x32x96xf32>
    %367 = vector.shape_cast %366 : vector<1x32x96xf32> to vector<32x96xf32>
    %cst_144 = arith.constant dense<0.000000e+00> : vector<8x96xf32>
    %368 = tpu.matmul %309, %367, %cst_144 {dimension_numbers = #tpu.dot_dimension_numbers<[1], [0], [0], [1], [0, 0, 1, 1], [], []>} : vector<8x32xf32>, vector<32x96xf32>, vector<8x96xf32> -> vector<8x96xf32>
    %369 = arith.addf %368, %22 : vector<8x96xf32>
    %c1_145 = arith.constant 1 : index
    %c0_146 = arith.constant 0 : index
    %c0_147 = arith.constant 0 : index
    %370 = vector.load %arg5[%c1_145, %c0_146, %c0_147] : memref<2x32x96xf32, #tpu.memory_space<vmem>>, vector<1x32x96xf32>
    %371 = vector.shape_cast %370 : vector<1x32x96xf32> to vector<32x96xf32>
    %cst_148 = arith.constant dense<0.000000e+00> : vector<8x96xf32>
    %372 = tpu.matmul %337, %371, %cst_148 {dimension_numbers = #tpu.dot_dimension_numbers<[1], [0], [0], [1], [0, 0, 1, 1], [], []>} : vector<8x32xf32>, vector<32x96xf32>, vector<8x96xf32> -> vector<8x96xf32>
    %373 = vector.extract_strided_slice %369 {offsets = [0, 0], sizes = [8, 64], strides = [1, 1]} : vector<8x96xf32> to vector<8x64xf32>
    %374 = vector.extract_strided_slice %372 {offsets = [0, 0], sizes = [8, 64], strides = [1, 1]} : vector<8x96xf32> to vector<8x64xf32>
    %375 = arith.addf %373, %374 : vector<8x64xf32>
    %376 = arith.negf %375 : vector<8x64xf32>
    %377 = math.exp %376 : vector<8x64xf32>
    %cst_149 = arith.constant 1.000000e+00 : f32
    %378 = vector.broadcast %cst_149 : f32 to vector<8x64xf32>
    %379 = arith.addf %378, %377 : vector<8x64xf32>
    %380 = arith.divf %378, %379 : vector<8x64xf32>
    %381 = vector.extract_strided_slice %380 {offsets = [0, 0], sizes = [8, 32], strides = [1, 1]} : vector<8x64xf32> to vector<8x32xf32>
    %382 = vector.extract_strided_slice %380 {offsets = [0, 32], sizes = [8, 32], strides = [1, 1]} : vector<8x64xf32> to vector<8x32xf32>
    %383 = vector.extract_strided_slice %369 {offsets = [0, 64], sizes = [8, 32], strides = [1, 1]} : vector<8x96xf32> to vector<8x32xf32>
    %384 = vector.extract_strided_slice %372 {offsets = [0, 64], sizes = [8, 32], strides = [1, 1]} : vector<8x96xf32> to vector<8x32xf32>
    %385 = arith.addf %384, %30 : vector<8x32xf32>
    %386 = arith.mulf %381, %385 : vector<8x32xf32>
    %387 = arith.addf %383, %386 : vector<8x32xf32>
    %388 = math.tanh %387 : vector<8x32xf32>
    %cst_150 = arith.constant 1.000000e+00 : f32
    %389 = vector.broadcast %cst_150 : f32 to vector<8x32xf32>
    %390 = arith.subf %389, %382 : vector<8x32xf32>
    %391 = arith.mulf %390, %388 : vector<8x32xf32>
    %392 = arith.mulf %382, %337 : vector<8x32xf32>
    %393 = arith.addf %391, %392 : vector<8x32xf32>
    %cst_151 = arith.constant dense<0.000000e+00> : vector<8x128xf32>
    %394 = tpu.matmul %393, %31, %cst_151 {dimension_numbers = #tpu.dot_dimension_numbers<[1], [0], [0], [1], [0, 0, 1, 1], [], []>} : vector<8x32xf32>, vector<32x128xf32>, vector<8x128xf32> -> vector<8x128xf32>
    %395 = arith.addf %394, %18 : vector<8x128xf32>
    %c0_152 = arith.constant 0 : index
    %c640 = arith.constant 640 : index
    %396 = vector.load %arg10[%c0_152, %c640] : memref<8x1024xf32, #tpu.memory_space<vmem>>, vector<8x128xf32>
    tpu.vector_store %arg10[%c0_152, %c640], %395 {strides = array<i32>} : memref<8x1024xf32, #tpu.memory_space<vmem>>, vector<8x128xf32>,
    %c56 = arith.constant 56 : index
    %c0_153 = arith.constant 0 : index
    %397 = vector.load %arg12[%c56, %c0_153] : memref<64x96xf32, #tpu.memory_space<vmem>>, vector<8x96xf32>
    %c0_154 = arith.constant 0 : index
    %c0_155 = arith.constant 0 : index
    %c0_156 = arith.constant 0 : index
    %398 = vector.load %arg5[%c0_154, %c0_155, %c0_156] : memref<2x32x96xf32, #tpu.memory_space<vmem>>, vector<1x32x96xf32>
    %399 = vector.shape_cast %398 : vector<1x32x96xf32> to vector<32x96xf32>
    %cst_157 = arith.constant dense<0.000000e+00> : vector<8x96xf32>
    %400 = tpu.matmul %365, %399, %cst_157 {dimension_numbers = #tpu.dot_dimension_numbers<[1], [0], [0], [1], [0, 0, 1, 1], [], []>} : vector<8x32xf32>, vector<32x96xf32>, vector<8x96xf32> -> vector<8x96xf32>
    %401 = vector.extract_strided_slice %397 {offsets = [0, 0], sizes = [8, 64], strides = [1, 1]} : vector<8x96xf32> to vector<8x64xf32>
    %402 = vector.extract_strided_slice %400 {offsets = [0, 0], sizes = [8, 64], strides = [1, 1]} : vector<8x96xf32> to vector<8x64xf32>
    %403 = arith.addf %401, %402 : vector<8x64xf32>
    %404 = arith.negf %403 : vector<8x64xf32>
    %405 = math.exp %404 : vector<8x64xf32>
    %cst_158 = arith.constant 1.000000e+00 : f32
    %406 = vector.broadcast %cst_158 : f32 to vector<8x64xf32>
    %407 = arith.addf %406, %405 : vector<8x64xf32>
    %408 = arith.divf %406, %407 : vector<8x64xf32>
    %409 = vector.extract_strided_slice %408 {offsets = [0, 0], sizes = [8, 32], strides = [1, 1]} : vector<8x64xf32> to vector<8x32xf32>
    %410 = vector.extract_strided_slice %408 {offsets = [0, 32], sizes = [8, 32], strides = [1, 1]} : vector<8x64xf32> to vector<8x32xf32>
    %411 = vector.extract_strided_slice %397 {offsets = [0, 64], sizes = [8, 32], strides = [1, 1]} : vector<8x96xf32> to vector<8x32xf32>
    %412 = vector.extract_strided_slice %400 {offsets = [0, 64], sizes = [8, 32], strides = [1, 1]} : vector<8x96xf32> to vector<8x32xf32>
    %413 = arith.addf %412, %26 : vector<8x32xf32>
    %414 = arith.mulf %409, %413 : vector<8x32xf32>
    %415 = arith.addf %411, %414 : vector<8x32xf32>
    %416 = math.tanh %415 : vector<8x32xf32>
    %cst_159 = arith.constant 1.000000e+00 : f32
    %417 = vector.broadcast %cst_159 : f32 to vector<8x32xf32>
    %418 = arith.subf %417, %410 : vector<8x32xf32>
    %419 = arith.mulf %418, %416 : vector<8x32xf32>
    %420 = arith.mulf %410, %365 : vector<8x32xf32>
    %421 = arith.addf %419, %420 : vector<8x32xf32>
    %c1_160 = arith.constant 1 : index
    %c0_161 = arith.constant 0 : index
    %c0_162 = arith.constant 0 : index
    %422 = vector.load %arg4[%c1_160, %c0_161, %c0_162] : memref<2x32x96xf32, #tpu.memory_space<vmem>>, vector<1x32x96xf32>
    %423 = vector.shape_cast %422 : vector<1x32x96xf32> to vector<32x96xf32>
    %cst_163 = arith.constant dense<0.000000e+00> : vector<8x96xf32>
    %424 = tpu.matmul %365, %423, %cst_163 {dimension_numbers = #tpu.dot_dimension_numbers<[1], [0], [0], [1], [0, 0, 1, 1], [], []>} : vector<8x32xf32>, vector<32x96xf32>, vector<8x96xf32> -> vector<8x96xf32>
    %425 = arith.addf %424, %22 : vector<8x96xf32>
    %c1_164 = arith.constant 1 : index
    %c0_165 = arith.constant 0 : index
    %c0_166 = arith.constant 0 : index
    %426 = vector.load %arg5[%c1_164, %c0_165, %c0_166] : memref<2x32x96xf32, #tpu.memory_space<vmem>>, vector<1x32x96xf32>
    %427 = vector.shape_cast %426 : vector<1x32x96xf32> to vector<32x96xf32>
    %cst_167 = arith.constant dense<0.000000e+00> : vector<8x96xf32>
    %428 = tpu.matmul %393, %427, %cst_167 {dimension_numbers = #tpu.dot_dimension_numbers<[1], [0], [0], [1], [0, 0, 1, 1], [], []>} : vector<8x32xf32>, vector<32x96xf32>, vector<8x96xf32> -> vector<8x96xf32>
    %429 = vector.extract_strided_slice %425 {offsets = [0, 0], sizes = [8, 64], strides = [1, 1]} : vector<8x96xf32> to vector<8x64xf32>
    %430 = vector.extract_strided_slice %428 {offsets = [0, 0], sizes = [8, 64], strides = [1, 1]} : vector<8x96xf32> to vector<8x64xf32>
    %431 = arith.addf %429, %430 : vector<8x64xf32>
    %432 = arith.negf %431 : vector<8x64xf32>
    %433 = math.exp %432 : vector<8x64xf32>
    %cst_168 = arith.constant 1.000000e+00 : f32
    %434 = vector.broadcast %cst_168 : f32 to vector<8x64xf32>
    %435 = arith.addf %434, %433 : vector<8x64xf32>
    %436 = arith.divf %434, %435 : vector<8x64xf32>
    %437 = vector.extract_strided_slice %436 {offsets = [0, 0], sizes = [8, 32], strides = [1, 1]} : vector<8x64xf32> to vector<8x32xf32>
    %438 = vector.extract_strided_slice %436 {offsets = [0, 32], sizes = [8, 32], strides = [1, 1]} : vector<8x64xf32> to vector<8x32xf32>
    %439 = vector.extract_strided_slice %425 {offsets = [0, 64], sizes = [8, 32], strides = [1, 1]} : vector<8x96xf32> to vector<8x32xf32>
    %440 = vector.extract_strided_slice %428 {offsets = [0, 64], sizes = [8, 32], strides = [1, 1]} : vector<8x96xf32> to vector<8x32xf32>
    %441 = arith.addf %440, %30 : vector<8x32xf32>
    %442 = arith.mulf %437, %441 : vector<8x32xf32>
    %443 = arith.addf %439, %442 : vector<8x32xf32>
    %444 = math.tanh %443 : vector<8x32xf32>
    %cst_169 = arith.constant 1.000000e+00 : f32
    %445 = vector.broadcast %cst_169 : f32 to vector<8x32xf32>
    %446 = arith.subf %445, %438 : vector<8x32xf32>
    %447 = arith.mulf %446, %444 : vector<8x32xf32>
    %448 = arith.mulf %438, %393 : vector<8x32xf32>
    %449 = arith.addf %447, %448 : vector<8x32xf32>
    %cst_170 = arith.constant dense<0.000000e+00> : vector<8x128xf32>
    %450 = tpu.matmul %449, %31, %cst_170 {dimension_numbers = #tpu.dot_dimension_numbers<[1], [0], [0], [1], [0, 0, 1, 1], [], []>} : vector<8x32xf32>, vector<32x128xf32>, vector<8x128xf32> -> vector<8x128xf32>
    %451 = arith.addf %450, %18 : vector<8x128xf32>
    %c0_171 = arith.constant 0 : index
    %c768 = arith.constant 768 : index
    %452 = vector.load %arg10[%c0_171, %c768] : memref<8x1024xf32, #tpu.memory_space<vmem>>, vector<8x128xf32>
    tpu.vector_store %arg10[%c0_171, %c768], %451 {strides = array<i32>} : memref<8x1024xf32, #tpu.memory_space<vmem>>, vector<8x128xf32>,
    %c1_172 = arith.constant 1 : index
    %c0_173 = arith.constant 0 : index
    %c0_174 = arith.constant 0 : index
    %453 = vector.load %arg4[%c1_172, %c0_173, %c0_174] : memref<2x32x96xf32, #tpu.memory_space<vmem>>, vector<1x32x96xf32>
    %454 = vector.shape_cast %453 : vector<1x32x96xf32> to vector<32x96xf32>
    %cst_175 = arith.constant dense<0.000000e+00> : vector<8x96xf32>
    %455 = tpu.matmul %421, %454, %cst_175 {dimension_numbers = #tpu.dot_dimension_numbers<[1], [0], [0], [1], [0, 0, 1, 1], [], []>} : vector<8x32xf32>, vector<32x96xf32>, vector<8x96xf32> -> vector<8x96xf32>
    %456 = arith.addf %455, %22 : vector<8x96xf32>
    %c1_176 = arith.constant 1 : index
    %c0_177 = arith.constant 0 : index
    %c0_178 = arith.constant 0 : index
    %457 = vector.load %arg5[%c1_176, %c0_177, %c0_178] : memref<2x32x96xf32, #tpu.memory_space<vmem>>, vector<1x32x96xf32>
    %458 = vector.shape_cast %457 : vector<1x32x96xf32> to vector<32x96xf32>
    %cst_179 = arith.constant dense<0.000000e+00> : vector<8x96xf32>
    %459 = tpu.matmul %449, %458, %cst_179 {dimension_numbers = #tpu.dot_dimension_numbers<[1], [0], [0], [1], [0, 0, 1, 1], [], []>} : vector<8x32xf32>, vector<32x96xf32>, vector<8x96xf32> -> vector<8x96xf32>
    %460 = vector.extract_strided_slice %456 {offsets = [0, 0], sizes = [8, 64], strides = [1, 1]} : vector<8x96xf32> to vector<8x64xf32>
    %461 = vector.extract_strided_slice %459 {offsets = [0, 0], sizes = [8, 64], strides = [1, 1]} : vector<8x96xf32> to vector<8x64xf32>
    %462 = arith.addf %460, %461 : vector<8x64xf32>
    %463 = arith.negf %462 : vector<8x64xf32>
    %464 = math.exp %463 : vector<8x64xf32>
    %cst_180 = arith.constant 1.000000e+00 : f32
    %465 = vector.broadcast %cst_180 : f32 to vector<8x64xf32>
    %466 = arith.addf %465, %464 : vector<8x64xf32>
    %467 = arith.divf %465, %466 : vector<8x64xf32>
    %468 = vector.extract_strided_slice %467 {offsets = [0, 0], sizes = [8, 32], strides = [1, 1]} : vector<8x64xf32> to vector<8x32xf32>
    %469 = vector.extract_strided_slice %467 {offsets = [0, 32], sizes = [8, 32], strides = [1, 1]} : vector<8x64xf32> to vector<8x32xf32>
    %470 = vector.extract_strided_slice %456 {offsets = [0, 64], sizes = [8, 32], strides = [1, 1]} : vector<8x96xf32> to vector<8x32xf32>
    %471 = vector.extract_strided_slice %459 {offsets = [0, 64], sizes = [8, 32], strides = [1, 1]} : vector<8x96xf32> to vector<8x32xf32>
    %472 = arith.addf %471, %30 : vector<8x32xf32>
    %473 = arith.mulf %468, %472 : vector<8x32xf32>
    %474 = arith.addf %470, %473 : vector<8x32xf32>
    %475 = math.tanh %474 : vector<8x32xf32>
    %cst_181 = arith.constant 1.000000e+00 : f32
    %476 = vector.broadcast %cst_181 : f32 to vector<8x32xf32>
    %477 = arith.subf %476, %469 : vector<8x32xf32>
    %478 = arith.mulf %477, %475 : vector<8x32xf32>
    %479 = arith.mulf %469, %449 : vector<8x32xf32>
    %480 = arith.addf %478, %479 : vector<8x32xf32>
    %cst_182 = arith.constant dense<0.000000e+00> : vector<8x128xf32>
    %481 = tpu.matmul %480, %31, %cst_182 {dimension_numbers = #tpu.dot_dimension_numbers<[1], [0], [0], [1], [0, 0, 1, 1], [], []>} : vector<8x32xf32>, vector<32x128xf32>, vector<8x128xf32> -> vector<8x128xf32>
    %482 = arith.addf %481, %18 : vector<8x128xf32>
    %c0_183 = arith.constant 0 : index
    %c896 = arith.constant 896 : index
    %483 = vector.load %arg10[%c0_183, %c896] : memref<8x1024xf32, #tpu.memory_space<vmem>>, vector<8x128xf32>
    tpu.vector_store %arg10[%c0_183, %c896], %482 {strides = array<i32>} : memref<8x1024xf32, #tpu.memory_space<vmem>>, vector<8x128xf32>,
    %c0_184 = arith.constant 0 : index
    %c0_185 = arith.constant 0 : index
    %c0_186 = arith.constant 0 : index
    %484 = vector.load %arg11[%c0_184, %c0_185, %c0_186] : memref<2x8x32xf32, #tpu.memory_space<vmem>>, vector<1x8x32xf32>
    %485 = vector.shape_cast %484 : vector<1x8x32xf32> to vector<8x32xf32>
    %486 = vector.shape_cast %421 : vector<8x32xf32> to vector<1x8x32xf32>
    tpu.vector_store %arg11[%c0_184, %c0_185, %c0_186], %486 {strides = array<i32>} : memref<2x8x32xf32, #tpu.memory_space<vmem>>, vector<1x8x32xf32>,
    %c1_187 = arith.constant 1 : index
    %c0_188 = arith.constant 0 : index
    %c0_189 = arith.constant 0 : index
    %487 = vector.load %arg11[%c1_187, %c0_188, %c0_189] : memref<2x8x32xf32, #tpu.memory_space<vmem>>, vector<1x8x32xf32>
    %488 = vector.shape_cast %487 : vector<1x8x32xf32> to vector<8x32xf32>
    %489 = vector.shape_cast %480 : vector<8x32xf32> to vector<1x8x32xf32>
    tpu.vector_store %arg11[%c1_187, %c0_188, %c0_189], %489 {strides = array<i32>} : memref<2x8x32xf32, #tpu.memory_space<vmem>>, vector<1x8x32xf32>,
    return
  }
  func.func @transform_0(%arg0: i32) -> (i32, i32) {
    %c0_i32 = arith.constant 0 : i32
    %c0_i32_0 = arith.constant 0 : i32
    %c0_i32_1 = arith.constant 0 : i32
    return %c0_i32, %c0_i32_0 : i32, i32
  }
  func.func @transform_1(%arg0: i32) -> (i32, i32) {
    %c0_i32 = arith.constant 0 : i32
    %c0_i32_0 = arith.constant 0 : i32
    %c0_i32_1 = arith.constant 0 : i32
    return %c0_i32, %c0_i32_0 : i32, i32
  }
  func.func @transform_2(%arg0: i32) -> (i32, i32, i32) {
    %c0_i32 = arith.constant 0 : i32
    %c0_i32_0 = arith.constant 0 : i32
    %c0_i32_1 = arith.constant 0 : i32
    %c0_i32_2 = arith.constant 0 : i32
    return %c0_i32, %c0_i32_0, %c0_i32_1 : i32, i32, i32
  }
  func.func @transform_3(%arg0: i32) -> (i32, i32, i32) {
    %c0_i32 = arith.constant 0 : i32
    %c0_i32_0 = arith.constant 0 : i32
    %c0_i32_1 = arith.constant 0 : i32
    %c0_i32_2 = arith.constant 0 : i32
    return %c0_i32, %c0_i32_0, %c0_i32_1 : i32, i32, i32
  }
  func.func @transform_4(%arg0: i32) -> (i32, i32, i32) {
    %c0_i32 = arith.constant 0 : i32
    %c0_i32_0 = arith.constant 0 : i32
    %c0_i32_1 = arith.constant 0 : i32
    %c0_i32_2 = arith.constant 0 : i32
    return %c0_i32, %c0_i32_0, %c0_i32_1 : i32, i32, i32
  }
  func.func @transform_5(%arg0: i32) -> (i32, i32, i32) {
    %c0_i32 = arith.constant 0 : i32
    %c0_i32_0 = arith.constant 0 : i32
    %c0_i32_1 = arith.constant 0 : i32
    %c0_i32_2 = arith.constant 0 : i32
    return %c0_i32, %c0_i32_0, %c0_i32_1 : i32, i32, i32
  }
  func.func @transform_6(%arg0: i32) -> (i32, i32, i32) {
    %c0_i32 = arith.constant 0 : i32
    %c0_i32_0 = arith.constant 0 : i32
    %c0_i32_1 = arith.constant 0 : i32
    %c0_i32_2 = arith.constant 0 : i32
    return %c0_i32, %c0_i32_0, %c0_i32_1 : i32, i32, i32
  }
  func.func @transform_7(%arg0: i32) -> (i32, i32) {
    %c0_i32 = arith.constant 0 : i32
    %c0_i32_0 = arith.constant 0 : i32
    %c0_i32_1 = arith.constant 0 : i32
    return %c0_i32, %c0_i32_0 : i32, i32
  }
  func.func @transform_8(%arg0: i32) -> (i32, i32) {
    %c0_i32 = arith.constant 0 : i32
    %c0_i32_0 = arith.constant 0 : i32
    %c0_i32_1 = arith.constant 0 : i32
    return %c0_i32, %c0_i32_0 : i32, i32
  }
  func.func @transform_9(%arg0: i32) -> (i32, i32) {
    %c0_i32 = arith.constant 0 : i32
    %c0_i32_0 = arith.constant 0 : i32
    %c0_i32_1 = arith.constant 0 : i32
    return %c0_i32, %c0_i32_0 : i32, i32
  }
  func.func @transform_10(%arg0: i32) -> (i32, i32, i32) {
    %c0_i32 = arith.constant 0 : i32
    %c0_i32_0 = arith.constant 0 : i32
    %c0_i32_1 = arith.constant 0 : i32
    %c0_i32_2 = arith.constant 0 : i32
    return %c0_i32, %c0_i32_0, %c0_i32_1 : i32, i32, i32
  }
}

</mosaic_0001>

<bundles_post_ra>
// kernel: tpu_custom_call.1
= control target key start
LH: loop header
LB: loop body
LE: loop exit
PB: predicated region body
PF: predicated region fallthrough
CT: control target
= control target key end

     0   :  { %16 = vsyncpa [#allocation4], 0  ;;  %s5253_s0 = inlined_call_operand.vmem [shape: s32[64,1], index: 0, kind: input, shape index: {}]   ;;  %s5254_s1 = inlined_call_operand.vmem [shape: f32[64,32], index: 1, kind: input, shape index: {}]   ;;  %s5255_s2 = inlined_call_operand.hbm [shape: f32[2,8,32], index: 2, kind: input, shape index: {}]   ;;  %s5256_s3 = inlined_call_operand.vmem [shape: f32[2,32,96], index: 3, kind: input, shape index: {}]   ;;  %s5257_s4 = inlined_call_operand.vmem [shape: f32[2,32,96], index: 4, kind: input, shape index: {}]   ;;  %s5258_s5 = inlined_call_operand.vmem [shape: f32[2,1,96], index: 5, kind: input, shape index: {}]   ;;  %s5259_s6 = inlined_call_operand.vmem [shape: f32[2,1,32], index: 6, kind: input, shape index: {}]   ;;  %s5260_s7 = inlined_call_operand.hbm [shape: f32[32,128], index: 7, kind: input, shape index: {}]   ;;  %s5261_s8 = inlined_call_operand.vmem [shape: f32[1,128], index: 8, kind: input, shape index: {}]   ;;  %s5262_s9 = inlined_call_operand.hbm [shape: f32[8,1024], index: 9, kind: output, shape index: {0}]   ;;  %s5263_s10 = inlined_call_operand.hbm [shape: f32[2,8,32], index: 10, kind: output, shape index: {1}]  }
   0x1   :  { %17 = vsyncpa [#allocation7], 0 }
   0x2   :  { %18 = vsyncpa [#allocation5], 0 }
   0x3   :  { %19 = vsyncpa [#allocation10], 0  ;;  %s4518_s13 = smov [#allocation3]   ;;  %s4422_s17 = scalar_lea.hbm %s5255_s2, 256 }
   0x4   :  { %s29_s14 = sshll.u32 %s4518_s13, 4  ;;  %p4423_p0 = scmp.ne.s32.totalorder %s5255_s2, %s4422_s17  ;;  %s30_s14 = int_to_ptr.vmem [resolvable:$true] %s29_s14 }
   0x5   :  { %p4426_p1 = scmp.lt.u32.totalorder %s4422_s17, %s5255_s2 }
   0x7   :  { %p4428_p2 = pnand %p4426_p1, %p4423_p0 }
   0x9   :  { %4431 = shalt.err (!%p4428_p2)
}
   0xa   :  { %s4432_s22 = scalar_lea.vmem %s30_s14, 256  ;;  %p4437_p4 = scmp.lt.s32.totalorder %s30_s14, %s30_s14 }
   0xb   :  { %p4433_p3 = scmp.ne.s32.totalorder %s30_s14, %s4432_s22  ;;  %p4438_p5 = scmp.lt.s32.totalorder %s4432_s22, %s4432_s22 }
   0xd   :  { %p4439_p6 = por %p4438_p5, %p4437_p4 }
   0xf   :  { %p4440_p7 = pnand %p4439_p6, %p4433_p3 }
  0x11   :  { %4443 = shalt.err (!%p4440_p7)
}
  0x12   :  { %s4519_s23 = smov 128   ;;  %s4520_s24 = smov 8  }
  0x13   :  { %35 = dma.hbm_to_vmem [thread:$0]  %s5255_s2, 256, %s30_s14, [#allocation4], %s4519_s23, %s4519_s23, %s4520_s24  }
  0x14   :  { %s4521_s27 = smov [#allocation6]   ;;  %s4444_s11 = scalar_lea.hbm %s5260_s7, 512 }
  0x15   :  { %s49_s28 = sshll.u32 %s4521_s27, 4  ;;  %p4445_p8 = scmp.ne.s32.totalorder %s5260_s7, %s4444_s11  ;;  %s50_s28 = int_to_ptr.vmem [resolvable:$true] %s49_s28 }
  0x16   :  { %p4448_p9 = scmp.lt.u32.totalorder %s4444_s11, %s5260_s7 }
  0x18   :  { %p4450_p10 = pnand %p4448_p9, %p4445_p8 }
  0x1a   :  { %4453 = shalt.err (!%p4450_p10)
}
  0x1b   :  { %s4454_s17 = scalar_lea.vmem %s50_s28, 512  ;;  %p4459_p12 = scmp.lt.s32.totalorder %s50_s28, %s50_s28 }
  0x1c   :  { %p4455_p11 = scmp.ne.s32.totalorder %s50_s28, %s4454_s17  ;;  %p4460_p13 = scmp.lt.s32.totalorder %s4454_s17, %s4454_s17 }
  0x1e   :  { %p4461_p0 = por %p4460_p13, %p4459_p12 }
  0x20   :  { %p4462_p1 = pnand %p4461_p0, %p4455_p11 }
  0x22   :  { %4465 = shalt.err (!%p4462_p1)
}
  0x23   :  { %55 = dma.hbm_to_vmem [thread:$0]  %s5260_s7, 512, %s50_s28, [#allocation7], %s4519_s23, %s4519_s23, %s4520_s24  }
  0x24   :  { %4510 = dma.done.wait [#allocation4], 256  }
  0x25   :  { %4511 = vsyncadd [#allocation4], 4294967040 }
  0x26   :  { %4512 = dma.done.wait [#allocation7], 512  }
  0x27   :  { %4513 = vsyncadd [#allocation7], 4294966784  ;;  %v4522_v0 = vmov 0   ;;  %vm83_vm0 = vcmask 261120   ;;  %v72_v1 = vld [vmem:[%s5256_s3] sm:$0xff]  ;;  %v73_v2 = vld [vmem:[%s5256_s3 + $0x8] sm:$0xff]  ;;  %v221_v27 = vlaneseq }
  0x28   :  { %4322 = vset.pattern.permute.xlu0 %v4522_v0  ;;  %4323 = vset.pattern.permute.xlu1 %v4522_v0  ;;  %v74_v3 = vld [vmem:[%s5256_s3 + $0x10] sm:$0xff]  ;;  %v4093_v4 = vpack.c.bf16 %v73_v2, %v72_v1  ;;  %v75_v5 = vld [vmem:[%s5256_s3 + $0x18] sm:$0xff]  ;;  %v64_v6 = vld [vmem:[%s5254_s1] sm:$0xff]  ;;  %v4523_v15 = vmov 0.0|0.0   ;;  %vm4524_vm1 = vmmov 0   ;;  %v4525_v24 = vmov 0.0  }
  0x29   :  { %v4097_v7 = vpack.c.bf16 %v75_v5, %v74_v3  ;;  %3701 = vmatprep.mubr.msk.f32.mxu0 %vm83_vm0, %v64_v6  ;;  %v213_v8 = vld [vmem:[%s5253_s0] sm:$0xff]  ;;  %v447_v10 = vld [vmem:[%s5257_s4 + $0x8] sm:$0xff]  ;;  %v66_v14 = vld [vmem:[%s5254_s1 + $0x10] sm:$0xff]  ;;  %s4526_s17 = smov 64   ;;  %v4703_v28 = vand.u32 127, %v221_v27  ;;  %vm271_vm2 = vcmask 523264  }
  0x2a   :  { %4094 = vmatprep.subr.bf16.mxu0 %v4093_v4  ;;  %224 = vperm.xlu0 %4322, %v213_v8   ;;  %v446_v9 = vld [vmem:[%s5257_s4] sm:$0xff]  ;;  %v214_v11 = vld [vmem:[%s5253_s0 + $0x8] sm:$0xff]  ;;  %v448_v16 = vld [vmem:[%s5257_s4 + $0x10] sm:$0xff]  ;;  %vm401_vm5 = vcmask 785408   ;;  %s4527_s18 = smov 32   ;;  %s4528_s26 = smov 96  }
  0x2b   :  { %4096 = vmatpush3.bf16.msra.mxu0 %v4093_v4  ;;  %v65_v12 = vld [vmem:[%s5254_s1 + $0x8] sm:$0xff]  ;;  %v4647_v13 = vpack.c.bf16 %v447_v10, %v446_v9  ;;  %v449_v17 = vld [vmem:[%s5257_s4 + $0x18] sm:$0xff]  ;;  %v68_v20 = vld [vmem:[%s5254_s1 + $0x20] sm:$0xff] }
  0x2c   :  { %4098 = vmatprep.subr.bf16.mxu0 %v4097_v7  ;;  %v67_v18 = vld [vmem:[%s5254_s1 + $0x18] sm:$0xff]  ;;  %v4665_v19 = vpack.c.bf16 %v449_v17, %v448_v16  ;;  %v69_v21 = vld [vmem:[%s5254_s1 + $0x28] sm:$0xff]  ;;  %v70_v22 = vld [vmem:[%s5254_s1 + $0x30] sm:$0xff] }
  0x2d   :  { %v71_v23 = vld [vmem:[%s5254_s1 + $0x38] sm:$0xff]  ;;  %v4689_v25 = vld [vmem:[#allocation3] sm:$0xff]  ;;  %v215_v4 = vld [vmem:[%s5253_s0 + $0x10] sm:$0xff] }
  0x2e   :  { %227 = vperm.xlu0 %4322, %v214_v11   ;;  %v3390_v26 = vld [vmem:[%s5259_s6] ss:$0 sm:$0xff]  ;;  %v219_v6 = vld [vmem:[%s5253_s0 + $0x30] sm:$0xff] }
  0x2f   :  { %4100 = vmatpush3.bf16.msra.mxu0 %v4097_v7  ;;  %530 = vrot.lane.b32.xlu1 %v3390_v26, %s4526_s17  ;;  %v3362_v31 = vld [vmem:[%s5258_s5] ss:$0 sm:$0xff]  ;;  %v3398_v26 = vld [vmem:[%s5256_s3 + $0x28] sm:$0xff] }
  0x30   :  { %4117 = vmatprep.subr.bf16.mxu0 %v4523_v15  ;;  %v217_v5 = vld [vmem:[%s5253_s0 + $0x20] sm:$0xff] }
  0x32   :  { %3702 = vmatmul.mubr.msk.f32.vlgmr.msra.gmra.mrb[0].mxu0 %vm83_vm0, %v65_v12 }
  0x33   :  { %3704 = vmatprep.mubr.msk.f32.mxu0 %vm83_vm0, %v66_v14  ;;  %4119 = vmatpush3.bf16.msra.mxu0 %v4647_v13 }
  0x34   :  { %4120 = vmatprep.subr.bf16.mxu0 %v4523_v15 }
  0x36   :  { %3705 = vmatmul.mubr.msk.f32.gmra.mrb[2].mxu0 %vm83_vm0, %v67_v18 }
  0x37   :  { %3707 = vmatprep.mubr.msk.f32.mxu0 %vm83_vm0, %v68_v20  ;;  %4122 = vmatpush3.bf16.msra.mxu0 %v4665_v19 }
  0x38   :  { %4123 = vmatprep.subr.bf16.mxu0 %v4523_v15 }
  0x3a   :  { %3708 = vmatmul.mubr.msk.f32.gmra.mrb[4].mxu0 %vm83_vm0, %v69_v21  ;;  %v216_v21 = vld [vmem:[%s5253_s0 + $0x18] sm:$0xff] }
  0x3b   :  { %3710 = vmatprep.mubr.msk.f32.mxu0 %vm83_vm0, %v70_v22  ;;  %v218_v22 = vld [vmem:[%s5253_s0 + $0x28] sm:$0xff] }
  0x3e   :  { %3711 = vmatmul.mubr.msk.f32.gmra.mrb[6].mxu0 %vm83_vm0, %v71_v23  ;;  %v220_v23 = vld [vmem:[%s5253_s0 + $0x38] sm:$0xff] }
  0x3f   :  { %3749 = vmatprep.mubr.msk.f32.mxu0 %vm4524_vm1, %v4525_v24 }
  0x42   :  { %3750 = vmatmul.mubr.msk.f32.vlgmr.msra.gmra.mrb[8].mxu0 %vm83_vm0, %v4689_v25 }
  0x43   :  { %4125 = vmatpush3.bf16.msra.mxu0 %v4647_v13  ;;  %3760 = vmatprep.mubr.msk.f32.mxu0 %vm4524_vm1, %v4525_v24 }
  0x44   :  { %4126 = vmatprep.subr.bf16.mxu0 %v4523_v15 }
  0x47   :  { %4128 = vmatpush3.bf16.msra.mxu0 %v4665_v19 }
  0x48   :  { %4135 = vmatprep.subr.bf16.mxu0 %v4523_v15 }
  0xa1   :  { %v4711_v51 = vpop.permute.xlu1 %530 }
  0xa9   :  { %v225_v29 = vpop.permute.xlu0 %224 }
  0xaa   :  { %vm247_vm3 = vcmp.eq.s32.totalorder %v225_v29, %v4703_v28  ;;  %v3399_v29 = vld [vmem:[%s5256_s3 + $0x30] sm:$0xff] }
  0xab   :  { %v3371_v30 = vsel %vm247_vm3, 1.0, %v4525_v24 }
  0xac   :  { %3729 = vmatprep.mubr.msk.f32.mxu1 %vm271_vm2, %v3371_v30  ;;  %v3400_v30 = vld [vmem:[%s5256_s3 + $0x38] sm:$0xff] }
  0xad   :  { %v228_v52 = vpop.permute.xlu0 %227 }
  0xae   :  { %vm248_vm4 = vcmp.eq.s32.totalorder %v228_v52, %v4703_v28 }
  0xaf   :  { %v3372_v57 = vsel %vm248_vm4, 1.0, %v4525_v24 }
 0x105   :  { %v3703_v32 = vpop.f32.mrb[0].mxu0 }
 0x106   :  { %v180_v33 = vadd.f32 %v3703_v32, %v3362_v31  ;;  %v174_v34 = vpop.f32.mrb[1].mxu0  ;;  %v3392_v32 = vld [vmem:[%s5259_s6 + $0x1] ss:$0 sm:$0xff] }
 0x107   :  { %v175_v35 = vadd.f32 %v3362_v31, %v174_v34  ;;  %v3403_v34 = vld [vmem:[%s5257_s4 + $0x28] sm:$0xff] }
 0x109   :  { %v3706_v36 = vpop.f32.mrb[2].mxu0  ;;  %v4101_v37 = vpack.c.bf16 %v180_v33, %v175_v35  ;;  %v3402_v33 = vld [vmem:[%s5257_s4 + $0x20] sm:$0xff] }
 0x10a   :  { %v190_v38 = vadd.f32 %v3706_v36, %v3362_v31  ;;  %v184_v39 = vpop.f32.mrb[3].mxu0  ;;  %v4780_v35 = vpack.c.bf16 %v3403_v34, %v3402_v33  ;;  %v3404_v36 = vld [vmem:[%s5257_s4 + $0x30] sm:$0xff]  ;;  %v439_v33 = vld [vmem:[#allocation6 + $0x8] sm:$0xff] }
 0x10b   :  { %v185_v40 = vadd.f32 %v3362_v31, %v184_v39  ;;  %4102 = vmatprep.subr.bf16.mxu1 %v4101_v37 }
 0x10c   :  { %4104 = vmatpush3.bf16.msra.mxu1 %v4101_v37  ;;  %v3405_v37 = vld [vmem:[%s5257_s4 + $0x38] sm:$0xff] }
 0x10d   :  { %v4105_v41 = vpack.c.bf16 %v190_v38, %v185_v40  ;;  %v3709_v42 = vpop.f32.mrb[4].mxu0  ;;  %v4790_v39 = vpack.c.bf16 %v3405_v37, %v3404_v36  ;;  %v4796_v40 = vld [vmem:[#allocation3 + $0x8] sm:$0xff]  ;;  %v440_v37 = vld [vmem:[#allocation6 + $0x10] sm:$0xff] }
 0x10e   :  { %v200_v43 = vadd.f32 %v3709_v42, %v3362_v31  ;;  %v194_v44 = vpop.f32.mrb[5].mxu0 }
 0x10f   :  { %v195_v45 = vadd.f32 %v3362_v31, %v194_v44  ;;  %4106 = vmatprep.subr.bf16.mxu1 %v4105_v41 }
 0x110   :  { %4108 = vmatpush3.bf16.msra.mxu1 %v4105_v41 }
 0x111   :  { %v4109_v46 = vpack.c.bf16 %v200_v43, %v195_v45  ;;  %v3712_v47 = vpop.f32.mrb[6].mxu0 }
 0x112   :  { %v210_v48 = vadd.f32 %v3712_v47, %v3362_v31  ;;  %v204_v49 = vpop.f32.mrb[7].mxu0 }
 0x113   :  { %v205_v50 = vadd.f32 %v3362_v31, %v204_v49  ;;  %4110 = vmatprep.subr.bf16.mxu1 %v4109_v46  ;;  %v4766_v31 = vpack.c.bf16 %v3400_v30, %v3399_v29 }
 0x114   :  { %4112 = vmatpush3.bf16.msra.mxu1 %v4109_v46 }
 0x115   :  { %v4113_v53 = vpack.c.bf16 %v210_v48, %v205_v50  ;;  %v519_v54 = vpop.f32.mrb[8].mxu0 }
 0x116   :  { %v3751_v55 = vpop.f32.mrb[9].mxu0  ;;  %v533_v56 = vadd.f32 %v4711_v51, %v519_v54 }
 0x117   :  { %4114 = vmatprep.subr.bf16.mxu1 %v4113_v53 }
 0x118   :  { %4116 = vmatpush3.bf16.msra.mxu1 %v4113_v53  ;;  %535 = vrot.lane.b32.xlu1 %v533_v56, %s4526_s17 }
 0x119   :  { %4129 = vmatprep.subr.bf16.mxu1 %v4523_v15 }
 0x11b   :  { %3730 = vmatmul.mubr.msk.f32.vlgmr.msra.gmra.mrb[0].mxu1 %vm271_vm2, %v3372_v57 }
 0x18a   :  { %v536_v1 = vpop.permute.xlu1 %535 }
 0x1ee   :  { %v3731_v58 = vpop.f32.mrb[0].mxu1 }
 0x1ef   :  { %403 = vst.msk [vmem:[#allocation2 + $0x8] sm:$0xff] %vm401_vm5, %v3731_v58  ;;  %v362_v59 = vpop.f32.mrb[1].mxu1 }
 0x1f0   :  { %402 = vst.msk [vmem:[#allocation2] sm:$0xff] %vm401_vm5, %v362_v59 }
 0x1f7   :  { %v445_v60 = vld [vmem:[#allocation2] sm:$0xff] }
 0x1f8   :  { %v523_v61 = vadd.f32 %v519_v54, %v445_v60 }
 0x1fa   :  { %v3394_v62 = vmul.f32 -1.442695, %v523_v61 }
 0x1fc   :  { %4324 = vpow2.f32 %v3394_v62 }
 0x206   :  { %v4325_v63 = vpop.eup %4324 }
 0x207   :  { %v527_v0 = vadd.f32 1.0, %v4325_v63 }
 0x209   :  { %4326 = vrcp.f32 %v527_v0 }
 0x213   :  { %v4327_v2 = vpop.eup %4326 }
 0x214   :  { %v538_v3 = vmul.f32 %v4327_v2, %v536_v1  ;;  %v545_v14 = vsub.f32 1.0, %v4327_v2 }
 0x216   :  { %540 = vrot.lane.b32.xlu0 %v538_v3, %s4526_s17 }
 0x21a   :  { %551 = vrot.lane.b32.xlu0 %v4689_v25, %s4527_s18  ;;  %v3397_v25 = vld [vmem:[%s5256_s3 + $0x20] sm:$0xff] }
 0x21b   :  { %v4756_v27 = vpack.c.bf16 %v3398_v26, %v3397_v25 }
 0x21d   :  { %4131 = vmatpush3.bf16.msra.mxu1 %v4756_v27 }
 0x21e   :  { %230 = vperm.xlu0 %4322, %v215_v4   ;;  %4132 = vmatprep.subr.bf16.mxu1 %v4523_v15  ;;  %v4842_v4 = vld [vmem:[%s5258_s5 + $0x1] ss:$0 sm:$0xff] }
 0x221   :  { %4134 = vmatpush3.bf16.msra.mxu1 %v4766_v31 }
 0x222   :  { %236 = vperm.xlu0 %4322, %v217_v5   ;;  %4141 = vmatprep.subr.bf16.mxu1 %v4523_v15 }
 0x226   :  { %242 = vperm.xlu0 %4322, %v219_v6  }
 0x22a   :  { %819 = vrot.lane.b32.xlu0 %v3392_v32, %s4526_s17  ;;  %v438_v32 = vld [vmem:[#allocation6] sm:$0xff] }
 0x22b   :  { %v4848_v34 = vpack.c.bf16 %v439_v33, %v438_v32 }
 0x288   :  { %v541_v7 = vpop.permute.xlu0 %540 }
 0x289   :  { %v543_v8 = vadd.f32 %v541_v7, %v445_v60 }
 0x28b   :  { %4328 = vtanh.f32 %v543_v8 }
 0x28c   :  { %v552_v10 = vpop.permute.xlu0 %551 }
 0x28d   :  { %v554_v17 = vmul.f32 %v4327_v2, %v552_v10  ;;  %v556_v2 = vld [vmem:[#allocation2 + $0x8] sm:$0xff] }
 0x295   :  { %v4329_v9 = vpop.eup %4328 }
 0x296   :  { %547 = vrot.lane.b32.xlu1 %v4329_v9, %s4528_s26 }
 0x29d   :  { %v231_v11 = vpop.permute.xlu0 %230 }
 0x29e   :  { %vm249_vm6 = vcmp.eq.s32.totalorder %v231_v11, %v4703_v28 }
 0x29f   :  { %v3373_v12 = vsel %vm249_vm6, 1.0, %v4525_v24 }
 0x2a0   :  { %3732 = vmatprep.mubr.msk.f32.mxu1 %vm271_vm2, %v3373_v12 }
 0x2a1   :  { %v237_v41 = vpop.permute.xlu0 %236 }
 0x2a2   :  { %vm251_vm7 = vcmp.eq.s32.totalorder %v237_v41, %v4703_v28 }
 0x2a3   :  { %v3375_v45 = vsel %vm251_vm7, 1.0, %v4525_v24 }
 0x2a5   :  { %v243_v43 = vpop.permute.xlu0 %242 }
 0x2a6   :  { %vm253_vm9 = vcmp.eq.s32.totalorder %v243_v43, %v4703_v28 }
 0x2a7   :  { %v3377_v48 = vsel %vm253_vm9, 1.0, %v4525_v24 }
 0x2a9   :  { %v4829_v55 = vpop.permute.xlu0 %819 }
 0x308   :  { %v548_v16 = vpop.permute.xlu1 %547 }
 0x309   :  { %v550_v18 = vmul.f32 %v548_v16, %v545_v14 }
 0x30b   :  { %v4737_v20 = vadd.f32 %v554_v17, %v550_v18 }
 0x30d   :  { %558 = vrot.lane.b32.xlu1 %v4737_v20, %s4528_s26 }
 0x311   :  { %233 = vperm.xlu1 %4323, %v216_v21  }
 0x315   :  { %239 = vperm.xlu1 %4323, %v218_v22  }
 0x319   :  { %245 = vperm.xlu1 %4323, %v220_v23  }
 0x37f   :  { %v559_v38 = vpop.permute.xlu1 %558 }
 0x380   :  { %3761 = vmatmul.mubr.msk.f32.vlgmr.msra.gmra.mrb[10].mxu0 %vm83_vm0, %v559_v38 }
 0x381   :  { %4137 = vmatpush3.bf16.msra.mxu0 %v4780_v35  ;;  %3782 = vmatprep.mubr.msk.f32.mxu0 %vm4524_vm1, %v4525_v24 }
 0x382   :  { %4138 = vmatprep.subr.bf16.mxu0 %v4523_v15 }
 0x385   :  { %4140 = vmatpush3.bf16.msra.mxu0 %v4790_v39 }
 0x386   :  { %4147 = vmatprep.subr.bf16.mxu0 %v4523_v15 }
 0x388   :  { %3783 = vmatmul.mubr.msk.f32.vlgmr.msra.gmra.mrb[12].mxu0 %vm83_vm0, %v4796_v40 }
 0x389   :  { %4149 = vmatpush3.bf16.msra.mxu0 %v4647_v13  ;;  %3804 = vmatprep.mubr.msk.f32.mxu0 %vm4524_vm1, %v4525_v24 }
 0x38a   :  { %4150 = vmatprep.subr.bf16.mxu0 %v4523_v15 }
 0x38d   :  { %4152 = vmatpush3.bf16.msra.mxu0 %v4665_v19 }
 0x38e   :  { %4159 = vmatprep.subr.bf16.mxu0 %v4523_v15 }
 0x390   :  { %v234_v42 = vpop.permute.xlu1 %233 }
 0x391   :  { %vm250_vm8 = vcmp.eq.s32.totalorder %v234_v42, %v4703_v28 }
 0x392   :  { %v3374_v44 = vsel %vm250_vm8, 1.0, %v4525_v24 }
 0x393   :  { %3733 = vmatmul.mubr.msk.f32.gmra.mrb[2].mxu1 %vm271_vm2, %v3374_v44 }
 0x394   :  { %v240_v46 = vpop.permute.xlu1 %239  ;;  %3735 = vmatprep.mubr.msk.f32.mxu1 %vm271_vm2, %v3375_v45 }
 0x395   :  { %vm252_vm10 = vcmp.eq.s32.totalorder %v240_v46, %v4703_v28 }
 0x396   :  { %v3376_v47 = vsel %vm252_vm10, 1.0, %v4525_v24 }
 0x397   :  { %3736 = vmatmul.mubr.msk.f32.gmra.mrb[4].mxu1 %vm271_vm2, %v3376_v47 }
 0x398   :  { %v246_v49 = vpop.permute.xlu1 %245  ;;  %3738 = vmatprep.mubr.msk.f32.mxu1 %vm271_vm2, %v3377_v48 }
 0x399   :  { %vm254_vm11 = vcmp.eq.s32.totalorder %v246_v49, %v4703_v28 }
 0x39a   :  { %v3378_v50 = vsel %vm254_vm11, 1.0, %v4525_v24 }
 0x39b   :  { %3739 = vmatmul.mubr.msk.f32.gmra.mrb[6].mxu1 %vm271_vm2, %v3378_v50 }
 0x39c   :  { %3771 = vmatprep.mubr.msk.f32.mxu1 %vm4524_vm1, %v4525_v24 }
 0x39f   :  { %3772 = vmatmul.mubr.msk.f32.vlgmr.msra.gmra.mrb[8].mxu1 %vm83_vm0, %v559_v38  ;;  %v441_v38 = vld [vmem:[#allocation6 + $0x18] sm:$0xff] }
 0x3a0   :  { %3793 = vmatprep.mubr.msk.f32.mxu1 %vm4524_vm1, %v4525_v24  ;;  %4143 = vmatpush3.bf16.msra.mxu1 %v4848_v34  ;;  %v4855_v41 = vpack.c.bf16 %v441_v38, %v440_v37 }
 0x3a1   :  { %4144 = vmatprep.subr.bf16.mxu1 %v4523_v15 }
 0x3a4   :  { %4146 = vmatpush3.bf16.msra.mxu1 %v4855_v41 }
 0x3a5   :  { %4153 = vmatprep.subr.bf16.mxu1 %v4523_v15 }
 0x453   :  { %v628_v52 = vpop.f32.mrb[10].mxu0 }
 0x454   :  { %v639_v53 = vadd.f32 %v628_v52, %v4711_v51  ;;  %v3762_v54 = vpop.f32.mrb[11].mxu0  ;;  %v632_v3 = vadd.f32 %v628_v52, %v556_v2 }
 0x456   :  { %641 = vrot.lane.b32.xlu1 %v639_v53, %s4526_s17  ;;  %v3396_v5 = vmul.f32 -1.442695, %v632_v3 }
 0x458   :  { %4330 = vpow2.f32 %v3396_v5 }
 0x45b   :  { %v808_v28 = vpop.f32.mrb[12].mxu0 }
 0x45c   :  { %v3784_v56 = vpop.f32.mrb[13].mxu0  ;;  %v822_v57 = vadd.f32 %v4829_v55, %v808_v28 }
 0x45e   :  { %824 = vrot.lane.b32.xlu0 %v822_v57, %s4526_s17  ;;  %v4901_v57 = vld [vmem:[%s5261_s8] ss:$0 sm:$0xff] }
 0x462   :  { %v4331_v9 = vpop.eup %4330 }
 0x463   :  { %v636_v10 = vadd.f32 1.0, %v4331_v9 }
 0x466   :  { %v3734_v58 = vpop.f32.mrb[2].mxu1 }
 0x467   :  { %405 = vst.msk [vmem:[#allocation2 + $0x18] sm:$0xff] %vm401_vm5, %v3734_v58  ;;  %v372_v59 = vpop.f32.mrb[3].mxu1 }
 0x468   :  { %404 = vst.msk [vmem:[#allocation2 + $0x10] sm:$0xff] %vm401_vm5, %v372_v59 }
 0x46a   :  { %v3737_v60 = vpop.f32.mrb[4].mxu1 }
 0x46b   :  { %407 = vst.msk [vmem:[#allocation2 + $0x28] sm:$0xff] %vm401_vm5, %v3737_v60  ;;  %v382_v61 = vpop.f32.mrb[5].mxu1 }
 0x46c   :  { %406 = vst.msk [vmem:[#allocation2 + $0x20] sm:$0xff] %vm401_vm5, %v382_v61 }
 0x46e   :  { %v3740_v62 = vpop.f32.mrb[6].mxu1 }
 0x46f   :  { %409 = vst.msk [vmem:[#allocation2 + $0x38] sm:$0xff] %vm401_vm5, %v3740_v62  ;;  %v392_v63 = vpop.f32.mrb[7].mxu1 }
 0x470   :  { %408 = vst.msk [vmem:[#allocation2 + $0x30] sm:$0xff] %vm401_vm5, %v392_v63 }
 0x472   :  { %v730_v0 = vpop.f32.mrb[8].mxu1 }
 0x473   :  { %v3773_v1 = vpop.f32.mrb[9].mxu1  ;;  %v731_v6 = vadd.f32 %v4842_v4, %v730_v0 }
 0x475   :  { %v812_v7 = vadd.f32 %v808_v28, %v731_v6 }
 0x477   :  { %v3407_v8 = vmul.f32 -1.442695, %v812_v7 }
 0x479   :  { %4332 = vpow2.f32 %v3407_v8 }
 0x47a   :  { %4334 = vrcp.f32 %v636_v10 }
 0x483   :  { %v4333_v11 = vpop.eup %4332 }
 0x484   :  { %v816_v12 = vadd.f32 1.0, %v4333_v11  ;;  %v4335_v14 = vpop.eup %4334 }
 0x485   :  { %v651_v42 = vsub.f32 1.0, %v4335_v14  ;;  %v657_v44 = vmul.f32 %v4335_v14, %v4737_v20 }
 0x486   :  { %4336 = vrcp.f32 %v816_v12 }
 0x490   :  { %v4337_v18 = vpop.eup %4336 }
 0x491   :  { %v834_v47 = vsub.f32 1.0, %v4337_v18 }
 0x4c8   :  { %v642_v16 = vpop.permute.xlu1 %641 }
 0x4c9   :  { %v644_v17 = vmul.f32 %v4335_v14, %v642_v16 }
 0x4cb   :  { %646 = vrot.lane.b32.xlu1 %v644_v17, %s4526_s17 }
 0x4d0   :  { %v825_v21 = vpop.permute.xlu0 %824 }
 0x4d1   :  { %v827_v22 = vmul.f32 %v4337_v18, %v825_v21 }
 0x4d3   :  { %829 = vrot.lane.b32.xlu0 %v827_v22, %s4526_s17 }
 0x53d   :  { %v647_v23 = vpop.permute.xlu1 %646 }
 0x53e   :  { %v649_v25 = vadd.f32 %v647_v23, %v556_v2  ;;  %v921_v2 = vld [vmem:[#allocation2 + $0x10] sm:$0xff] }
 0x540   :  { %4338 = vtanh.f32 %v649_v25 }
 0x545   :  { %v830_v26 = vpop.permute.xlu0 %829 }
 0x546   :  { %v832_v29 = vadd.f32 %v830_v26, %v731_v6 }
 0x548   :  { %4340 = vtanh.f32 %v832_v29 }
 0x54a   :  { %v4339_v30 = vpop.eup %4338 }
 0x54b   :  { %653 = vrot.lane.b32.xlu1 %v4339_v30, %s4528_s26 }
 0x54f   :  { %840 = vrot.lane.b32.xlu1 %v4796_v40, %s4527_s18 }
 0x552   :  { %v4341_v36 = vpop.eup %4340 }
 0x553   :  { %836 = vrot.lane.b32.xlu0 %v4341_v36, %s4528_s26 }
 0x5bd   :  { %v654_v43 = vpop.permute.xlu1 %653 }
 0x5be   :  { %v656_v45 = vmul.f32 %v654_v43, %v651_v42 }
 0x5c0   :  { %v4860_v46 = vadd.f32 %v657_v44, %v656_v45 }
 0x5c1   :  { %v841_v40 = vpop.permute.xlu1 %840 }
 0x5c2   :  { %927 = vrot.lane.b32.xlu0 %v4860_v46, %s4528_s26  ;;  %v843_v49 = vmul.f32 %v4337_v18, %v841_v40 }
 0x5c5   :  { %v837_v48 = vpop.permute.xlu0 %836 }
 0x5c6   :  { %v839_v50 = vmul.f32 %v837_v48, %v834_v47 }
 0x5c8   :  { %v4864_v52 = vadd.f32 %v843_v49, %v839_v50 }
 0x5ca   :  { %846 = vrot.lane.b32.xlu1 %v4864_v52, %s4528_s26 }
 0x634   :  { %v928_v53 = vpop.permute.xlu0 %927 }
 0x635   :  { %3805 = vmatmul.mubr.msk.f32.vlgmr.msra.gmra.mrb[14].mxu0 %vm83_vm0, %v928_v53 }
 0x636   :  { %4161 = vmatpush3.bf16.msra.mxu0 %v4780_v35  ;;  %3826 = vmatprep.mubr.msk.f32.mxu0 %vm4524_vm1, %v4525_v24 }
 0x637   :  { %4162 = vmatprep.subr.bf16.mxu0 %v4523_v15 }
 0x63a   :  { %4164 = vmatpush3.bf16.msra.mxu0 %v4790_v39 }
 0x63b   :  { %4171 = vmatprep.subr.bf16.mxu0 %v4523_v15 }
 0x63c   :  { %v847_v20 = vpop.permute.xlu1 %846 }
 0x63d   :  { %3794 = vmatmul.mubr.msk.f32.vlgmr.msra.gmra.mrb[10].mxu1 %vm83_vm0, %v847_v20  ;;  %3827 = vmatmul.mubr.msk.f32.vlgmr.msra.gmra.mrb[16].mxu0 %vm83_vm0, %v847_v20 }
 0x63e   :  { %4155 = vmatpush3.bf16.msra.mxu1 %v4756_v27  ;;  %3815 = vmatprep.mubr.msk.f32.mxu1 %vm4524_vm1, %v4525_v24 }
 0x63f   :  { %4156 = vmatprep.subr.bf16.mxu1 %v4523_v15  ;;  %4173 = vmatpush3.bf16.msra.mxu0 %v4647_v13 }
 0x640   :  { %4174 = vmatprep.subr.bf16.mxu0 %v4523_v15  ;;  %3848 = vmatprep.mubr.msk.f32.mxu0 %vm4524_vm1, %v4525_v24 }
 0x642   :  { %4158 = vmatpush3.bf16.msra.mxu1 %v4766_v31 }
 0x643   :  { %4176 = vmatpush3.bf16.msra.mxu0 %v4665_v19  ;;  %4165 = vmatprep.subr.bf16.mxu1 %v4523_v15 }
 0x644   :  { %4183 = vmatprep.subr.bf16.mxu0 %v4523_v15 }
 0x645   :  { %3816 = vmatmul.mubr.msk.f32.vlgmr.msra.gmra.mrb[12].mxu1 %vm83_vm0, %v928_v53 }
 0x646   :  { %4167 = vmatpush3.bf16.msra.mxu1 %v4848_v34  ;;  %3837 = vmatprep.mubr.msk.f32.mxu1 %vm4524_vm1, %v4525_v24 }
 0x647   :  { %4168 = vmatprep.subr.bf16.mxu1 %v4523_v15 }
 0x64a   :  { %4170 = vmatpush3.bf16.msra.mxu1 %v4855_v41 }
 0x64b   :  { %4177 = vmatprep.subr.bf16.mxu1 %v4523_v15 }
 0x708   :  { %v997_v54 = vpop.f32.mrb[14].mxu0 }
 0x709   :  { %v1008_v28 = vadd.f32 %v997_v54, %v4711_v51  ;;  %v3806_v56 = vpop.f32.mrb[15].mxu0  ;;  %v1001_v3 = vadd.f32 %v997_v54, %v921_v2 }
 0x70b   :  { %1010 = vrot.lane.b32.xlu0 %v1008_v28, %s4526_s17  ;;  %v3410_v5 = vmul.f32 -1.442695, %v1001_v3 }
 0x70d   :  { %4342 = vpow2.f32 %v3410_v5 }
 0x710   :  { %v916_v58 = vpop.f32.mrb[10].mxu1  ;;  %v1172_v59 = vpop.f32.mrb[16].mxu0 }
 0x711   :  { %v917_v60 = vadd.f32 %v4901_v57, %v916_v58  ;;  %v1183_v61 = vadd.f32 %v1172_v59, %v4829_v55  ;;  %v3795_v62 = vpop.f32.mrb[11].mxu1  ;;  %v3828_v63 = vpop.f32.mrb[17].mxu0 }
 0x713   :  { %920 = vst [vmem:[#allocation8] sm:$0xff] %v917_v60  ;;  %1185 = vrot.lane.b32.xlu1 %v1183_v61, %s4526_s17 }
 0x717   :  { %v4343_v9 = vpop.eup %4342 }
 0x718   :  { %v1098_v0 = vpop.f32.mrb[12].mxu1  ;;  %v1005_v10 = vadd.f32 1.0, %v4343_v9 }
 0x719   :  { %v3817_v1 = vpop.f32.mrb[13].mxu1  ;;  %v1099_v6 = vadd.f32 %v4842_v4, %v1098_v0 }
 0x71b   :  { %v1176_v7 = vadd.f32 %v1172_v59, %v1099_v6  ;;  %v1279_v59 = vld [vmem:[#allocation2 + $0x18] sm:$0xff] }
 0x71d   :  { %v3421_v8 = vmul.f32 -1.442695, %v1176_v7 }
 0x71f   :  { %4344 = vpow2.f32 %v3421_v8 }
 0x720   :  { %4346 = vrcp.f32 %v1005_v10 }
 0x729   :  { %v4345_v11 = vpop.eup %4344 }
 0x72a   :  { %v1180_v12 = vadd.f32 1.0, %v4345_v11  ;;  %v4347_v14 = vpop.eup %4346 }
 0x72b   :  { %v1020_v33 = vsub.f32 1.0, %v4347_v14  ;;  %v1026_v37 = vmul.f32 %v4347_v14, %v4860_v46 }
 0x72c   :  { %4348 = vrcp.f32 %v1180_v12 }
 0x736   :  { %v4349_v18 = vpop.eup %4348 }
 0x737   :  { %v1195_v43 = vsub.f32 1.0, %v4349_v18  ;;  %v1201_v45 = vmul.f32 %v4349_v18, %v4864_v52 }
 0x77d   :  { %v1011_v16 = vpop.permute.xlu0 %1010 }
 0x77e   :  { %v1013_v17 = vmul.f32 %v4347_v14, %v1011_v16 }
 0x780   :  { %1015 = vrot.lane.b32.xlu0 %v1013_v17, %s4526_s17 }
 0x785   :  { %v1186_v21 = vpop.permute.xlu1 %1185 }
 0x786   :  { %v1188_v22 = vmul.f32 %v4349_v18, %v1186_v21 }
 0x788   :  { %1190 = vrot.lane.b32.xlu1 %v1188_v22, %s4526_s17 }
 0x7f2   :  { %v1016_v23 = vpop.permute.xlu0 %1015 }
 0x7f3   :  { %v1018_v25 = vadd.f32 %v1016_v23, %v921_v2 }
 0x7f5   :  { %4350 = vtanh.f32 %v1018_v25 }
 0x7fa   :  { %v1191_v26 = vpop.permute.xlu1 %1190 }
 0x7fb   :  { %v1193_v29 = vadd.f32 %v1191_v26, %v1099_v6 }
 0x7fd   :  { %4352 = vtanh.f32 %v1193_v29 }
 0x7ff   :  { %v4351_v30 = vpop.eup %4350 }
 0x800   :  { %1022 = vrot.lane.b32.xlu0 %v4351_v30, %s4528_s26 }
 0x807   :  { %v4353_v32 = vpop.eup %4352 }
 0x808   :  { %1197 = vrot.lane.b32.xlu1 %v4353_v32, %s4528_s26 }
 0x872   :  { %v1023_v36 = vpop.permute.xlu0 %1022 }
 0x873   :  { %v1025_v38 = vmul.f32 %v1023_v36, %v1020_v33 }
 0x875   :  { %v4912_v42 = vadd.f32 %v1026_v37, %v1025_v38 }
 0x877   :  { %1285 = vrot.lane.b32.xlu0 %v4912_v42, %s4528_s26 }
 0x87a   :  { %v1198_v44 = vpop.permute.xlu1 %1197 }
 0x87b   :  { %v1200_v40 = vmul.f32 %v1198_v44, %v1195_v43 }
 0x87d   :  { %v4917_v47 = vadd.f32 %v1201_v45, %v1200_v40 }
 0x87f   :  { %1204 = vrot.lane.b32.xlu1 %v4917_v47, %s4528_s26 }
 0x8e9   :  { %v1286_v48 = vpop.permute.xlu0 %1285 }
 0x8ea   :  { %3849 = vmatmul.mubr.msk.f32.vlgmr.msra.gmra.mrb[18].mxu0 %vm83_vm0, %v1286_v48 }
 0x8eb   :  { %4185 = vmatpush3.bf16.msra.mxu0 %v4780_v35  ;;  %3870 = vmatprep.mubr.msk.f32.mxu0 %vm4524_vm1, %v4525_v24 }
 0x8ec   :  { %4186 = vmatprep.subr.bf16.mxu0 %v4523_v15 }
 0x8ef   :  { %4188 = vmatpush3.bf16.msra.mxu0 %v4790_v39 }
 0x8f0   :  { %4195 = vmatprep.subr.bf16.mxu0 %v4523_v15 }
 0x8f1   :  { %v1205_v46 = vpop.permute.xlu1 %1204 }
 0x8f2   :  { %3838 = vmatmul.mubr.msk.f32.vlgmr.msra.gmra.mrb[14].mxu1 %vm83_vm0, %v1205_v46  ;;  %3871 = vmatmul.mubr.msk.f32.vlgmr.msra.gmra.mrb[20].mxu0 %vm83_vm0, %v1205_v46 }
 0x8f3   :  { %4179 = vmatpush3.bf16.msra.mxu1 %v4756_v27  ;;  %3859 = vmatprep.mubr.msk.f32.mxu1 %vm4524_vm1, %v4525_v24 }
 0x8f4   :  { %4180 = vmatprep.subr.bf16.mxu1 %v4523_v15  ;;  %4197 = vmatpush3.bf16.msra.mxu0 %v4647_v13 }
 0x8f5   :  { %4198 = vmatprep.subr.bf16.mxu0 %v4523_v15  ;;  %3892 = vmatprep.mubr.msk.f32.mxu0 %vm4524_vm1, %v4525_v24 }
 0x8f7   :  { %4182 = vmatpush3.bf16.msra.mxu1 %v4766_v31 }
 0x8f8   :  { %4200 = vmatpush3.bf16.msra.mxu0 %v4665_v19  ;;  %4189 = vmatprep.subr.bf16.mxu1 %v4523_v15 }
 0x8f9   :  { %4207 = vmatprep.subr.bf16.mxu0 %v4523_v15 }
 0x8fa   :  { %3860 = vmatmul.mubr.msk.f32.vlgmr.msra.gmra.mrb[16].mxu1 %vm83_vm0, %v1286_v48 }
 0x8fb   :  { %4191 = vmatpush3.bf16.msra.mxu1 %v4848_v34  ;;  %3881 = vmatprep.mubr.msk.f32.mxu1 %vm4524_vm1, %v4525_v24 }
 0x8fc   :  { %4192 = vmatprep.subr.bf16.mxu1 %v4523_v15 }
 0x8ff   :  { %4194 = vmatpush3.bf16.msra.mxu1 %v4855_v41 }
 0x900   :  { %4201 = vmatprep.subr.bf16.mxu1 %v4523_v15 }
 0x9bd   :  { %v1355_v13 = vpop.f32.mrb[18].mxu0 }
 0x9be   :  { %v1366_v19 = vadd.f32 %v1355_v13, %v4711_v51  ;;  %v3850_v49 = vpop.f32.mrb[19].mxu0  ;;  %v1359_v60 = vadd.f32 %v1355_v13, %v1279_v59 }
 0x9c0   :  { %1368 = vrot.lane.b32.xlu0 %v1366_v19, %s4526_s17  ;;  %v3424_v61 = vmul.f32 -1.442695, %v1359_v60 }
 0x9c2   :  { %4354 = vpow2.f32 %v3424_v61 }
 0x9c5   :  { %v1274_v50 = vpop.f32.mrb[14].mxu1  ;;  %v1530_v52 = vpop.f32.mrb[20].mxu0 }
 0x9c6   :  { %v1275_v53 = vadd.f32 %v4901_v57, %v1274_v50  ;;  %v1541_v20 = vadd.f32 %v1530_v52, %v4829_v55  ;;  %v3839_v54 = vpop.f32.mrb[15].mxu1  ;;  %v3872_v28 = vpop.f32.mrb[21].mxu0 }
 0x9c8   :  { %1278 = vst [vmem:[#allocation8 + $0x8] sm:$0xff] %v1275_v53  ;;  %1543 = vrot.lane.b32.xlu1 %v1541_v20, %s4526_s17 }
 0x9cc   :  { %v4355_v1 = vpop.eup %4354 }
 0x9cd   :  { %v1456_v56 = vpop.f32.mrb[16].mxu1  ;;  %v1363_v2 = vadd.f32 1.0, %v4355_v1 }
 0x9ce   :  { %v3861_v58 = vpop.f32.mrb[17].mxu1  ;;  %v1457_v62 = vadd.f32 %v4842_v4, %v1456_v56 }
 0x9d0   :  { %v1534_v63 = vadd.f32 %v1530_v52, %v1457_v62  ;;  %v1637_v52 = vld [vmem:[#allocation2 + $0x20] sm:$0xff] }
 0x9d2   :  { %v3435_v0 = vmul.f32 -1.442695, %v1534_v63 }
 0x9d4   :  { %4356 = vpow2.f32 %v3435_v0 }
 0x9d5   :  { %4358 = vrcp.f32 %v1363_v2 }
 0x9de   :  { %v4357_v3 = vpop.eup %4356 }
 0x9df   :  { %v1538_v5 = vadd.f32 1.0, %v4357_v3  ;;  %v4359_v6 = vpop.eup %4358 }
 0x9e0   :  { %v1378_v22 = vsub.f32 1.0, %v4359_v6  ;;  %v1384_v25 = vmul.f32 %v4359_v6, %v4912_v42 }
 0x9e1   :  { %4360 = vrcp.f32 %v1538_v5 }
 0x9eb   :  { %v4361_v9 = vpop.eup %4360 }
 0x9ec   :  { %v1553_v30 = vsub.f32 1.0, %v4361_v9  ;;  %v1559_v33 = vmul.f32 %v4361_v9, %v4917_v47 }
 0xa32   :  { %v1369_v7 = vpop.permute.xlu0 %1368 }
 0xa33   :  { %v1371_v8 = vmul.f32 %v4359_v6, %v1369_v7 }
 0xa35   :  { %1373 = vrot.lane.b32.xlu0 %v1371_v8, %s4526_s17 }
 0xa3a   :  { %v1544_v10 = vpop.permute.xlu1 %1543 }
 0xa3b   :  { %v1546_v11 = vmul.f32 %v4361_v9, %v1544_v10  ;;  %v1996_v10 = vld [vmem:[%s5257_s4] sm:$0xff] }
 0xa3d   :  { %1548 = vrot.lane.b32.xlu1 %v1546_v11, %s4526_s17  ;;  %v1997_v11 = vld [vmem:[%s5257_s4 + $0x8] sm:$0xff] }
 0xaa7   :  { %v1374_v12 = vpop.permute.xlu0 %1373 }
 0xaa8   :  { %v1376_v14 = vadd.f32 %v1374_v12, %v1279_v59  ;;  %v1998_v12 = vld [vmem:[%s5257_s4 + $0x10] sm:$0xff] }
 0xaaa   :  { %4362 = vtanh.f32 %v1376_v14  ;;  %v5011_v14 = vpack.c.bf16 %v1997_v11, %v1996_v10 }
 0xaaf   :  { %v1549_v16 = vpop.permute.xlu1 %1548 }
 0xab0   :  { %v1551_v17 = vadd.f32 %v1549_v16, %v1457_v62  ;;  %v1999_v16 = vld [vmem:[%s5257_s4 + $0x18] sm:$0xff] }
 0xab2   :  { %4364 = vtanh.f32 %v1551_v17  ;;  %v5017_v17 = vpack.c.bf16 %v1999_v16, %v1998_v12 }
 0xab4   :  { %v4363_v18 = vpop.eup %4362 }
 0xab5   :  { %1380 = vrot.lane.b32.xlu0 %v4363_v18, %s4528_s26 }
 0xabc   :  { %v4365_v21 = vpop.eup %4364 }
 0xabd   :  { %1555 = vrot.lane.b32.xlu1 %v4365_v21, %s4528_s26 }
 0xb27   :  { %v1381_v23 = vpop.permute.xlu0 %1380 }
 0xb28   :  { %v1383_v26 = vmul.f32 %v1381_v23, %v1378_v22 }
 0xb2a   :  { %v4960_v29 = vadd.f32 %v1384_v25, %v1383_v26 }
 0xb2c   :  { %1643 = vrot.lane.b32.xlu0 %v4960_v29, %s4528_s26 }
 0xb2f   :  { %v1556_v32 = vpop.permute.xlu1 %1555 }
 0xb30   :  { %v1558_v36 = vmul.f32 %v1556_v32, %v1553_v30 }
 0xb32   :  { %v4965_v37 = vadd.f32 %v1559_v33, %v1558_v36 }
 0xb34   :  { %1562 = vrot.lane.b32.xlu1 %v4965_v37, %s4528_s26 }
 0xb9e   :  { %v1644_v38 = vpop.permute.xlu0 %1643 }
 0xb9f   :  { %3893 = vmatmul.mubr.msk.f32.vlgmr.msra.gmra.mrb[22].mxu0 %vm83_vm0, %v1644_v38 }
 0xba0   :  { %4209 = vmatpush3.bf16.msra.mxu0 %v4780_v35  ;;  %3914 = vmatprep.mubr.msk.f32.mxu0 %vm4524_vm1, %v4525_v24 }
 0xba1   :  { %4210 = vmatprep.subr.bf16.mxu0 %v4523_v15 }
 0xba4   :  { %4212 = vmatpush3.bf16.msra.mxu0 %v4790_v39 }
 0xba5   :  { %4219 = vmatprep.subr.bf16.mxu0 %v4523_v15 }
 0xba6   :  { %v1563_v42 = vpop.permute.xlu1 %1562 }
 0xba7   :  { %3882 = vmatmul.mubr.msk.f32.vlgmr.msra.gmra.mrb[18].mxu1 %vm83_vm0, %v1563_v42  ;;  %3915 = vmatmul.mubr.msk.f32.vlgmr.msra.gmra.mrb[24].mxu0 %vm83_vm0, %v1563_v42 }
 0xba8   :  { %4203 = vmatpush3.bf16.msra.mxu1 %v4756_v27  ;;  %3903 = vmatprep.mubr.msk.f32.mxu1 %vm4524_vm1, %v4525_v24 }
 0xba9   :  { %4204 = vmatprep.subr.bf16.mxu1 %v4523_v15  ;;  %3936 = vmatprep.mubr.msk.f32.mxu0 %vm4524_vm1, %v4525_v24 }
 0xbaa   :  { %4221 = vmatpush3.bf16.msra.mxu0 %v5011_v14 }
 0xbab   :  { %4222 = vmatprep.subr.bf16.mxu0 %v4523_v15 }
 0xbac   :  { %4206 = vmatpush3.bf16.msra.mxu1 %v4766_v31 }
 0xbad   :  { %4213 = vmatprep.subr.bf16.mxu1 %v4523_v15 }
 0xbae   :  { %4224 = vmatpush3.bf16.msra.mxu0 %v5017_v17 }
 0xbaf   :  { %3904 = vmatmul.mubr.msk.f32.vlgmr.msra.gmra.mrb[20].mxu1 %vm83_vm0, %v1644_v38  ;;  %4231 = vmatprep.subr.bf16.mxu0 %v4523_v15 }
 0xbb0   :  { %4215 = vmatpush3.bf16.msra.mxu1 %v4848_v34  ;;  %3925 = vmatprep.mubr.msk.f32.mxu1 %vm4524_vm1, %v4525_v24 }
 0xbb1   :  { %4216 = vmatprep.subr.bf16.mxu1 %v4523_v15 }
 0xbb4   :  { %4218 = vmatpush3.bf16.msra.mxu1 %v4855_v41 }
 0xbb5   :  { %4225 = vmatprep.subr.bf16.mxu1 %v4523_v15 }
 0xc72   :  { %v1713_v43 = vpop.f32.mrb[22].mxu0 }
 0xc73   :  { %v1724_v44 = vadd.f32 %v1713_v43, %v4711_v51  ;;  %v3894_v45 = vpop.f32.mrb[23].mxu0  ;;  %v1717_v53 = vadd.f32 %v1713_v43, %v1637_v52 }
 0xc75   :  { %1726 = vrot.lane.b32.xlu0 %v1724_v44, %s4526_s17  ;;  %v3438_v20 = vmul.f32 -1.442695, %v1717_v53 }
 0xc77   :  { %4366 = vpow2.f32 %v3438_v20 }
 0xc7a   :  { %v1632_v40 = vpop.f32.mrb[18].mxu1  ;;  %v1888_v47 = vpop.f32.mrb[24].mxu0 }
 0xc7b   :  { %v1633_v48 = vadd.f32 %v4901_v57, %v1632_v40  ;;  %v1899_v46 = vadd.f32 %v1888_v47, %v4829_v55  ;;  %v3883_v13 = vpop.f32.mrb[19].mxu1  ;;  %v3916_v19 = vpop.f32.mrb[25].mxu0 }
 0xc7d   :  { %1636 = vst [vmem:[#allocation8 + $0x10] sm:$0xff] %v1633_v48  ;;  %1901 = vrot.lane.b32.xlu1 %v1899_v46, %s4526_s17 }
 0xc81   :  { %v4367_v58 = vpop.eup %4366 }
 0xc82   :  { %v1814_v49 = vpop.f32.mrb[20].mxu1  ;;  %v1721_v59 = vadd.f32 1.0, %v4367_v58 }
 0xc83   :  { %v3905_v50 = vpop.f32.mrb[21].mxu1  ;;  %v1815_v54 = vadd.f32 %v4842_v4, %v1814_v49  ;;  %v1995_v49 = vld [vmem:[#allocation2 + $0x28] sm:$0xff] }
 0xc85   :  { %v1892_v28 = vadd.f32 %v1888_v47, %v1815_v54 }
 0xc87   :  { %v3449_v56 = vmul.f32 -1.442695, %v1892_v28 }
 0xc89   :  { %4368 = vpow2.f32 %v3449_v56 }
 0xc8a   :  { %4370 = vrcp.f32 %v1721_v59 }
 0xc93   :  { %v4369_v60 = vpop.eup %4368 }
 0xc94   :  { %v1896_v61 = vadd.f32 1.0, %v4369_v60  ;;  %v4371_v62 = vpop.eup %4370 }
 0xc95   :  { %v1736_v21 = vsub.f32 1.0, %v4371_v62  ;;  %v1742_v23 = vmul.f32 %v4371_v62, %v4960_v29 }
 0xc96   :  { %4372 = vrcp.f32 %v1896_v61 }
 0xca0   :  { %v4373_v1 = vpop.eup %4372 }
 0xca1   :  { %v1911_v30 = vsub.f32 1.0, %v4373_v1  ;;  %v1917_v33 = vmul.f32 %v4373_v1, %v4965_v37 }
 0xce7   :  { %v1727_v63 = vpop.permute.xlu0 %1726 }
 0xce8   :  { %v1729_v0 = vmul.f32 %v4371_v62, %v1727_v63 }
 0xcea   :  { %1731 = vrot.lane.b32.xlu0 %v1729_v0, %s4526_s17 }
 0xcef   :  { %v1902_v2 = vpop.permute.xlu1 %1901 }
 0xcf0   :  { %v1904_v3 = vmul.f32 %v4373_v1, %v1902_v2 }
 0xcf2   :  { %1906 = vrot.lane.b32.xlu1 %v1904_v3, %s4526_s17 }
 0xd5c   :  { %v1732_v5 = vpop.permute.xlu0 %1731 }
 0xd5d   :  { %v1734_v6 = vadd.f32 %v1732_v5, %v1637_v52 }
 0xd5f   :  { %4374 = vtanh.f32 %v1734_v6 }
 0xd64   :  { %v1907_v7 = vpop.permute.xlu1 %1906 }
 0xd65   :  { %v1909_v8 = vadd.f32 %v1907_v7, %v1815_v54 }
 0xd67   :  { %4376 = vtanh.f32 %v1909_v8 }
 0xd69   :  { %v4375_v9 = vpop.eup %4374 }
 0xd6a   :  { %1738 = vrot.lane.b32.xlu0 %v4375_v9, %s4528_s26 }
 0xd71   :  { %v4377_v18 = vpop.eup %4376 }
 0xd72   :  { %1913 = vrot.lane.b32.xlu1 %v4377_v18, %s4528_s26 }
 0xddc   :  { %v1739_v22 = vpop.permute.xlu0 %1738 }
 0xddd   :  { %v1741_v25 = vmul.f32 %v1739_v22, %v1736_v21 }
 0xddf   :  { %v5024_v26 = vadd.f32 %v1742_v23, %v1741_v25 }
 0xde1   :  { %2001 = vrot.lane.b32.xlu0 %v5024_v26, %s4528_s26 }
 0xde4   :  { %v1914_v32 = vpop.permute.xlu1 %1913 }
 0xde5   :  { %v1916_v36 = vmul.f32 %v1914_v32, %v1911_v30  ;;  %v3475_v30 = vld [vmem:[%s5257_s4 + $0x38] sm:$0xff] }
 0xde7   :  { %v5029_v38 = vadd.f32 %v1917_v33, %v1916_v36 }
 0xde9   :  { %1920 = vrot.lane.b32.xlu1 %v5029_v38, %s4528_s26 }
 0xe53   :  { %v2002_v42 = vpop.permute.xlu0 %2001 }
 0xe54   :  { %3937 = vmatmul.mubr.msk.f32.vlgmr.msra.gmra.mrb[26].mxu0 %vm83_vm0, %v2002_v42 }
 0xe55   :  { %4233 = vmatpush3.bf16.msra.mxu0 %v4780_v35  ;;  %3958 = vmatprep.mubr.msk.f32.mxu0 %vm4524_vm1, %v4525_v24 }
 0xe56   :  { %4234 = vmatprep.subr.bf16.mxu0 %v4523_v15 }
 0xe59   :  { %4236 = vmatpush3.bf16.msra.mxu0 %v4790_v39 }
 0xe5a   :  { %4243 = vmatprep.subr.bf16.mxu0 %v4523_v15 }
 0xe5b   :  { %v1921_v29 = vpop.permute.xlu1 %1920 }
 0xe5c   :  { %3926 = vmatmul.mubr.msk.f32.vlgmr.msra.gmra.mrb[22].mxu1 %vm83_vm0, %v1921_v29  ;;  %3959 = vmatmul.mubr.msk.f32.vlgmr.msra.gmra.mrb[28].mxu0 %vm83_vm0, %v1921_v29 }
 0xe5d   :  { %4227 = vmatpush3.bf16.msra.mxu1 %v4756_v27  ;;  %3947 = vmatprep.mubr.msk.f32.mxu1 %vm4524_vm1, %v4525_v24 }
 0xe5e   :  { %4228 = vmatprep.subr.bf16.mxu1 %v4523_v15  ;;  %4245 = vmatpush3.bf16.msra.mxu0 %v5011_v14 }
 0xe5f   :  { %4246 = vmatprep.subr.bf16.mxu0 %v4523_v15  ;;  %3980 = vmatprep.mubr.msk.f32.mxu0 %vm4524_vm1, %v4525_v24 }
 0xe61   :  { %4230 = vmatpush3.bf16.msra.mxu1 %v4766_v31 }
 0xe62   :  { %4248 = vmatpush3.bf16.msra.mxu0 %v5017_v17  ;;  %4237 = vmatprep.subr.bf16.mxu1 %v4523_v15 }
 0xe63   :  { %4255 = vmatprep.subr.bf16.mxu0 %v4523_v15 }
 0xe64   :  { %3948 = vmatmul.mubr.msk.f32.vlgmr.msra.gmra.mrb[24].mxu1 %vm83_vm0, %v2002_v42 }
 0xe65   :  { %4239 = vmatpush3.bf16.msra.mxu1 %v4848_v34  ;;  %3969 = vmatprep.mubr.msk.f32.mxu1 %vm4524_vm1, %v4525_v24 }
 0xe66   :  { %4240 = vmatprep.subr.bf16.mxu1 %v4523_v15 }
 0xe69   :  { %4242 = vmatpush3.bf16.msra.mxu1 %v4855_v41 }
 0xe6a   :  { %4249 = vmatprep.subr.bf16.mxu1 %v4523_v15 }
 0xf27   :  { %v2071_v39 = vpop.f32.mrb[26].mxu0 }
 0xf28   :  { %v2082_v37 = vadd.f32 %v2071_v39, %v4711_v51  ;;  %v3938_v43 = vpop.f32.mrb[27].mxu0  ;;  %v2075_v50 = vadd.f32 %v2071_v39, %v1995_v49 }
 0xf2a   :  { %2084 = vrot.lane.b32.xlu0 %v2082_v37, %s4526_s17  ;;  %v3452_v52 = vmul.f32 -1.442695, %v2075_v50 }
 0xf2c   :  { %4378 = vpow2.f32 %v3452_v52 }
 0xf2f   :  { %v1990_v44 = vpop.f32.mrb[22].mxu1  ;;  %v2246_v45 = vpop.f32.mrb[28].mxu0 }
 0xf30   :  { %v1991_v40 = vadd.f32 %v4901_v57, %v1990_v44  ;;  %v2257_v47 = vadd.f32 %v2246_v45, %v4829_v55  ;;  %v3927_v48 = vpop.f32.mrb[23].mxu1  ;;  %v3960_v46 = vpop.f32.mrb[29].mxu0  ;;  %v2353_v44 = vld [vmem:[#allocation2 + $0x30] sm:$0xff] }
 0xf32   :  { %1994 = vst [vmem:[#allocation8 + $0x18] sm:$0xff] %v1991_v40  ;;  %2259 = vrot.lane.b32.xlu1 %v2257_v47, %s4526_s17 }
 0xf36   :  { %v4379_v28 = vpop.eup %4378 }
 0xf37   :  { %v2172_v13 = vpop.f32.mrb[24].mxu1  ;;  %v2079_v56 = vadd.f32 1.0, %v4379_v28 }
 0xf38   :  { %v3949_v19 = vpop.f32.mrb[25].mxu1  ;;  %v2173_v53 = vadd.f32 %v4842_v4, %v2172_v13 }
 0xf3a   :  { %v2250_v20 = vadd.f32 %v2246_v45, %v2173_v53 }
 0xf3c   :  { %v3463_v54 = vmul.f32 -1.442695, %v2250_v20 }
 0xf3e   :  { %4380 = vpow2.f32 %v3463_v54 }
 0xf3f   :  { %4382 = vrcp.f32 %v2079_v56 }
 0xf48   :  { %v4381_v58 = vpop.eup %4380 }
 0xf49   :  { %v2254_v59 = vadd.f32 1.0, %v4381_v58  ;;  %v4383_v60 = vpop.eup %4382 }
 0xf4a   :  { %v2094_v9 = vsub.f32 1.0, %v4383_v60  ;;  %v2100_v11 = vmul.f32 %v4383_v60, %v5024_v26  ;;  %v3474_v26 = vld [vmem:[%s5257_s4 + $0x30] sm:$0xff] }
 0xf4b   :  { %4384 = vrcp.f32 %v2254_v59  ;;  %v5089_v33 = vpack.c.bf16 %v3475_v30, %v3474_v26 }
 0xf55   :  { %v4385_v63 = vpop.eup %4384 }
 0xf56   :  { %v2269_v18 = vsub.f32 1.0, %v4385_v63  ;;  %v2275_v22 = vmul.f32 %v4385_v63, %v5029_v38 }
 0xf9c   :  { %v2085_v61 = vpop.permute.xlu0 %2084 }
 0xf9d   :  { %v2087_v62 = vmul.f32 %v4383_v60, %v2085_v61 }
 0xf9f   :  { %2089 = vrot.lane.b32.xlu0 %v2087_v62, %s4526_s17 }
 0xfa4   :  { %v2260_v0 = vpop.permute.xlu1 %2259 }
 0xfa5   :  { %v2262_v1 = vmul.f32 %v4385_v63, %v2260_v0 }
 0xfa7   :  { %2264 = vrot.lane.b32.xlu1 %v2262_v1, %s4526_s17 }
0x1011   :  { %v2090_v2 = vpop.permute.xlu0 %2089 }
0x1012   :  { %v2092_v3 = vadd.f32 %v2090_v2, %v1995_v49 }
0x1014   :  { %4386 = vtanh.f32 %v2092_v3 }
0x1019   :  { %v2265_v5 = vpop.permute.xlu1 %2264 }
0x101a   :  { %v2267_v6 = vadd.f32 %v2265_v5, %v2173_v53 }
0x101c   :  { %4388 = vtanh.f32 %v2267_v6 }
0x101e   :  { %v4387_v7 = vpop.eup %4386 }
0x101f   :  { %2096 = vrot.lane.b32.xlu0 %v4387_v7, %s4528_s26 }
0x1026   :  { %v4389_v8 = vpop.eup %4388 }
0x1027   :  { %2271 = vrot.lane.b32.xlu1 %v4389_v8, %s4528_s26 }
0x1091   :  { %v2097_v10 = vpop.permute.xlu0 %2096 }
0x1092   :  { %v2099_v12 = vmul.f32 %v2097_v10, %v2094_v9  ;;  %v3486_v10 = vld [vmem:[%s5257_s4 + $0x20] sm:$0xff] }
0x1094   :  { %v5072_v16 = vadd.f32 %v2100_v11, %v2099_v12  ;;  %v3487_v11 = vld [vmem:[%s5257_s4 + $0x28] sm:$0xff] }
0x1095   :  { %v5143_v12 = vpack.c.bf16 %v3487_v11, %v3486_v10 }
0x1096   :  { %2359 = vrot.lane.b32.xlu0 %v5072_v16, %s4528_s26 }
0x1099   :  { %v2272_v21 = vpop.permute.xlu1 %2271 }
0x109a   :  { %v2274_v23 = vmul.f32 %v2272_v21, %v2269_v18  ;;  %v3481_v18 = vld [vmem:[%s5256_s3 + $0x20] sm:$0xff]  ;;  %v3482_v21 = vld [vmem:[%s5256_s3 + $0x28] sm:$0xff] }
0x109c   :  { %v5077_v25 = vadd.f32 %v2275_v22, %v2274_v23  ;;  %v4274_v22 = vpack.c.bf16 %v3482_v21, %v3481_v18  ;;  %v3483_v23 = vld [vmem:[%s5256_s3 + $0x30] sm:$0xff] }
0x109e   :  { %2278 = vrot.lane.b32.xlu1 %v5077_v25, %s4528_s26 }
0x1108   :  { %v2360_v32 = vpop.permute.xlu0 %2359 }
0x1109   :  { %3981 = vmatmul.mubr.msk.f32.vlgmr.msra.gmra.mrb[30].mxu0 %vm83_vm0, %v2360_v32 }
0x110a   :  { %4257 = vmatpush3.bf16.msra.mxu0 %v4780_v35  ;;  %4002 = vmatprep.mubr.msk.f32.mxu0 %vm4524_vm1, %v4525_v24 }
0x110b   :  { %4258 = vmatprep.subr.bf16.mxu0 %v4523_v15 }
0x110e   :  { %4260 = vmatpush3.bf16.msra.mxu0 %v5089_v33 }
0x110f   :  { %4267 = vmatprep.subr.bf16.mxu0 %v4523_v15 }
0x1110   :  { %v2279_v36 = vpop.permute.xlu1 %2278 }
0x1111   :  { %3970 = vmatmul.mubr.msk.f32.vlgmr.msra.gmra.mrb[26].mxu1 %vm83_vm0, %v2279_v36  ;;  %4003 = vmatmul.mubr.msk.f32.vlgmr.msra.gmra.mrb[32].mxu0 %vm83_vm0, %v2279_v36 }
0x1112   :  { %4251 = vmatpush3.bf16.msra.mxu1 %v4756_v27  ;;  %3991 = vmatprep.mubr.msk.f32.mxu1 %vm4524_vm1, %v4525_v24 }
0x1113   :  { %4252 = vmatprep.subr.bf16.mxu1 %v4523_v15  ;;  %4269 = vmatpush3.bf16.msra.mxu0 %v5011_v14 }
0x1114   :  { %4270 = vmatprep.subr.bf16.mxu0 %v4523_v15  ;;  %4024 = vmatprep.mubr.msk.f32.mxu0 %vm4524_vm1, %v4525_v24 }
0x1116   :  { %4254 = vmatpush3.bf16.msra.mxu1 %v4766_v31 }
0x1117   :  { %4272 = vmatpush3.bf16.msra.mxu0 %v5017_v17  ;;  %4261 = vmatprep.subr.bf16.mxu1 %v4523_v15 }
0x1118   :  { %4279 = vmatprep.subr.bf16.mxu0 %v4523_v15 }
0x1119   :  { %3992 = vmatmul.mubr.msk.f32.vlgmr.msra.gmra.mrb[28].mxu1 %vm83_vm0, %v2360_v32 }
0x111a   :  { %4263 = vmatpush3.bf16.msra.mxu1 %v4848_v34  ;;  %4013 = vmatprep.mubr.msk.f32.mxu1 %vm4524_vm1, %v4525_v24 }
0x111b   :  { %4264 = vmatprep.subr.bf16.mxu1 %v4523_v15 }
0x111e   :  { %4266 = vmatpush3.bf16.msra.mxu1 %v4855_v41 }
0x111f   :  { %4273 = vmatprep.subr.bf16.mxu1 %v4523_v15 }
0x11dc   :  { %v2429_v27 = vpop.f32.mrb[30].mxu0 }
0x11dd   :  { %v2440_v31 = vadd.f32 %v2429_v27, %v4711_v51  ;;  %v3982_v35 = vpop.f32.mrb[31].mxu0  ;;  %v2433_v45 = vadd.f32 %v2429_v27, %v2353_v44 }
0x11df   :  { %2442 = vrot.lane.b32.xlu0 %v2440_v31, %s4526_s17  ;;  %v3466_v40 = vmul.f32 -1.442695, %v2433_v45 }
0x11e1   :  { %4390 = vpow2.f32 %v3466_v40 }
0x11e4   :  { %v2348_v14 = vpop.f32.mrb[26].mxu1  ;;  %v2604_v17 = vpop.f32.mrb[32].mxu0 }
0x11e5   :  { %v2349_v38 = vadd.f32 %v4901_v57, %v2348_v14  ;;  %v2615_v42 = vadd.f32 %v2604_v17, %v4829_v55  ;;  %v3971_v29 = vpop.f32.mrb[27].mxu1  ;;  %v4004_v39 = vpop.f32.mrb[33].mxu0 }
0x11e7   :  { %2352 = vst [vmem:[#allocation8 + $0x20] sm:$0xff] %v2349_v38  ;;  %2617 = vrot.lane.b32.xlu1 %v2615_v42, %s4526_s17 }
0x11eb   :  { %v4391_v13 = vpop.eup %4390 }
0x11ec   :  { %v2530_v37 = vpop.f32.mrb[28].mxu1  ;;  %v2437_v19 = vadd.f32 1.0, %v4391_v13 }
0x11ed   :  { %v3993_v43 = vpop.f32.mrb[29].mxu1  ;;  %v2531_v47 = vadd.f32 %v4842_v4, %v2530_v37  ;;  %v2711_v37 = vld [vmem:[#allocation2 + $0x38] sm:$0xff] }
0x11ef   :  { %v2608_v48 = vadd.f32 %v2604_v17, %v2531_v47 }
0x11f1   :  { %v3477_v46 = vmul.f32 -1.442695, %v2608_v48 }
0x11f3   :  { %4392 = vpow2.f32 %v3477_v46 }
0x11f4   :  { %4394 = vrcp.f32 %v2437_v19 }
0x11fd   :  { %v4393_v49 = vpop.eup %4392 }
0x11fe   :  { %v2612_v50 = vadd.f32 1.0, %v4393_v49  ;;  %v4395_v52 = vpop.eup %4394 }
0x11ff   :  { %v2452_v63 = vsub.f32 1.0, %v4395_v52  ;;  %v2458_v1 = vmul.f32 %v4395_v52, %v5072_v16 }
0x1200   :  { %4396 = vrcp.f32 %v2612_v50 }
0x120a   :  { %v4397_v54 = vpop.eup %4396 }
0x120b   :  { %v2627_v5 = vsub.f32 1.0, %v4397_v54  ;;  %v2633_v7 = vmul.f32 %v4397_v54, %v5077_v25  ;;  %v3484_v25 = vld [vmem:[%s5256_s3 + $0x38] sm:$0xff] }
0x120c   :  { %v4277_v30 = vpack.c.bf16 %v3484_v25, %v3483_v23 }
0x1251   :  { %v2443_v53 = vpop.permute.xlu0 %2442 }
0x1252   :  { %v2445_v20 = vmul.f32 %v4395_v52, %v2443_v53 }
0x1254   :  { %2447 = vrot.lane.b32.xlu0 %v2445_v20, %s4526_s17 }
0x1259   :  { %v2618_v28 = vpop.permute.xlu1 %2617 }
0x125a   :  { %v2620_v56 = vmul.f32 %v4397_v54, %v2618_v28 }
0x125c   :  { %2622 = vrot.lane.b32.xlu1 %v2620_v56, %s4526_s17 }
0x12c6   :  { %v2448_v4 = vpop.permute.xlu0 %2447 }
0x12c7   :  { %v2450_v58 = vadd.f32 %v2448_v4, %v2353_v44 }
0x12c9   :  { %4398 = vtanh.f32 %v2450_v58 }
0x12ce   :  { %v2623_v59 = vpop.permute.xlu1 %2622 }
0x12cf   :  { %v2625_v60 = vadd.f32 %v2623_v59, %v2531_v47 }
0x12d1   :  { %4400 = vtanh.f32 %v2625_v60 }
0x12d3   :  { %v4399_v61 = vpop.eup %4398 }
0x12d4   :  { %2454 = vrot.lane.b32.xlu0 %v4399_v61, %s4528_s26 }
0x12db   :  { %v4401_v62 = vpop.eup %4400 }
0x12dc   :  { %2629 = vrot.lane.b32.xlu1 %v4401_v62, %s4528_s26 }
0x1346   :  { %v2455_v0 = vpop.permute.xlu0 %2454 }
0x1347   :  { %v2457_v2 = vmul.f32 %v2455_v0, %v2452_v63 }
0x1349   :  { %v5128_v3 = vadd.f32 %v2458_v1, %v2457_v2 }
0x134b   :  { %2717 = vrot.lane.b32.xlu0 %v5128_v3, %s4528_s26 }
0x134e   :  { %v2630_v6 = vpop.permute.xlu1 %2629 }
0x134f   :  { %v2632_v8 = vmul.f32 %v2630_v6, %v2627_v5 }
0x1351   :  { %v5133_v9 = vadd.f32 %v2633_v7, %v2632_v8 }
0x1353   :  { %2636 = vrot.lane.b32.xlu1 %v5133_v9, %s4528_s26 }
0x13bd   :  { %v2718_v16 = vpop.permute.xlu0 %2717 }
0x13be   :  { %4025 = vmatmul.mubr.msk.f32.vlgmr.msra.gmra.mrb[34].mxu0 %vm83_vm0, %v2718_v16 }
0x13bf   :  { %4281 = vmatpush3.bf16.msra.mxu0 %v5143_v12  ;;  %4046 = vmatprep.mubr.msk.f32.mxu0 %vm4524_vm1, %v4525_v24 }
0x13c0   :  { %4282 = vmatprep.subr.bf16.mxu0 %v4523_v15 }
0x13c3   :  { %4284 = vmatpush3.bf16.msra.mxu0 %v5089_v33 }
0x13c4   :  { %4291 = vmatprep.subr.bf16.mxu0 %v4523_v15 }
0x13c5   :  { %v2637_v26 = vpop.permute.xlu1 %2636 }
0x13c6   :  { %4014 = vmatmul.mubr.msk.f32.vlgmr.msra.gmra.mrb[30].mxu1 %vm83_vm0, %v2637_v26  ;;  %4047 = vmatmul.mubr.msk.f32.vlgmr.msra.gmra.mrb[36].mxu0 %vm83_vm0, %v2637_v26 }
0x13c7   :  { %4275 = vmatpush3.bf16.msra.mxu1 %v4274_v22  ;;  %4035 = vmatprep.mubr.msk.f32.mxu1 %vm4524_vm1, %v4525_v24 }
0x13c8   :  { %4276 = vmatprep.subr.bf16.mxu1 %v4523_v15  ;;  %4293 = vmatpush3.bf16.msra.mxu0 %v4274_v22 }
0x13c9   :  { %4294 = vmatprep.subr.bf16.mxu0 %v4523_v15  ;;  %4068 = vmatprep.mubr.msk.f32.mxu0 %vm4524_vm1, %v4525_v24 }
0x13cb   :  { %4278 = vmatpush3.bf16.msra.mxu1 %v4277_v30 }
0x13cc   :  { %4296 = vmatpush3.bf16.msra.mxu0 %v4277_v30  ;;  %4285 = vmatprep.subr.bf16.mxu1 %v4523_v15 }
0x13cd   :  { %4303 = vmatprep.subr.bf16.mxu0 %v4523_v15 }
0x13ce   :  { %4036 = vmatmul.mubr.msk.f32.vlgmr.msra.gmra.mrb[32].mxu1 %vm83_vm0, %v2718_v16 }
0x13cf   :  { %4287 = vmatpush3.bf16.msra.mxu1 %v4848_v34  ;;  %4057 = vmatprep.mubr.msk.f32.mxu1 %vm4524_vm1, %v4525_v24 }
0x13d0   :  { %4288 = vmatprep.subr.bf16.mxu1 %v4523_v15 }
0x13d3   :  { %4290 = vmatpush3.bf16.msra.mxu1 %v4855_v41 }
0x13d4   :  { %4297 = vmatprep.subr.bf16.mxu1 %v4523_v15 }
0x1491   :  { %v2787_v32 = vpop.f32.mrb[34].mxu0 }
0x1492   :  { %v2798_v36 = vadd.f32 %v2787_v32, %v4711_v51  ;;  %v4026_v27 = vpop.f32.mrb[35].mxu0  ;;  %v2791_v43 = vadd.f32 %v2787_v32, %v2711_v37  ;;  %v5189_v51 = vld [vmem:[%s5258_s5 + $0x1] ss:$0 sm:$0xff]  ;;  %s4529_s5 = smov [#allocation9]  }
0x1494   :  { %2800 = vrot.lane.b32.xlu1 %v2798_v36, %s4526_s17  ;;  %v3480_v44 = vmul.f32 -1.442695, %v2791_v43 }
0x1496   :  { %4402 = vpow2.f32 %v3480_v44 }
0x1499   :  { %v2706_v31 = vpop.f32.mrb[30].mxu1  ;;  %v2962_v35 = vpop.f32.mrb[36].mxu0 }
0x149a   :  { %v2707_v14 = vadd.f32 %v4901_v57, %v2706_v31  ;;  %v2973_v17 = vadd.f32 %v2962_v35, %v4829_v55  ;;  %v4015_v38 = vpop.f32.mrb[31].mxu1  ;;  %v4048_v42 = vpop.f32.mrb[37].mxu0 }
0x149c   :  { %2710 = vst [vmem:[#allocation8 + $0x28] sm:$0xff] %v2707_v14  ;;  %2975 = vrot.lane.b32.xlu0 %v2973_v17, %s4526_s17 }
0x14a0   :  { %v4403_v48 = vpop.eup %4402 }
0x14a1   :  { %v2888_v29 = vpop.f32.mrb[32].mxu1  ;;  %v2795_v46 = vadd.f32 1.0, %v4403_v48 }
0x14a2   :  { %v4037_v39 = vpop.f32.mrb[33].mxu1  ;;  %v2889_v45 = vadd.f32 %v5189_v51, %v2888_v29 }
0x14a4   :  { %v2966_v40 = vadd.f32 %v2962_v35, %v2889_v45 }
0x14a6   :  { %v3491_v47 = vmul.f32 -1.442695, %v2966_v40 }
0x14a8   :  { %4404 = vpow2.f32 %v3491_v47 }
0x14a9   :  { %4406 = vrcp.f32 %v2795_v46 }
0x14b2   :  { %v4405_v13 = vpop.eup %4404 }
0x14b3   :  { %v2970_v19 = vadd.f32 1.0, %v4405_v13  ;;  %v4407_v49 = vpop.eup %4406 }
0x14b4   :  { %v2810_v61 = vsub.f32 1.0, %v4407_v49  ;;  %v2816_v63 = vmul.f32 %v4407_v49, %v5128_v3 }
0x14b5   :  { %4408 = vrcp.f32 %v2970_v19 }
0x14bf   :  { %v4409_v53 = vpop.eup %4408 }
0x14c0   :  { %v2985_v2 = vsub.f32 1.0, %v4409_v53  ;;  %v2991_v6 = vmul.f32 %v4409_v53, %v5133_v9 }
0x1506   :  { %v2801_v50 = vpop.permute.xlu1 %2800 }
0x1507   :  { %v2803_v52 = vmul.f32 %v4407_v49, %v2801_v50 }
0x1509   :  { %2805 = vrot.lane.b32.xlu1 %v2803_v52, %s4526_s17 }
0x150e   :  { %v2976_v20 = vpop.permute.xlu0 %2975 }
0x150f   :  { %v2978_v54 = vmul.f32 %v4409_v53, %v2976_v20 }
0x1511   :  { %2980 = vrot.lane.b32.xlu0 %v2978_v54, %s4526_s17 }
0x157b   :  { %v2806_v28 = vpop.permute.xlu1 %2805 }
0x157c   :  { %v2808_v56 = vadd.f32 %v2806_v28, %v2711_v37 }
0x157e   :  { %4410 = vtanh.f32 %v2808_v56 }
0x1583   :  { %v2981_v4 = vpop.permute.xlu0 %2980 }
0x1584   :  { %v2983_v58 = vadd.f32 %v2981_v4, %v2889_v45 }
0x1586   :  { %4412 = vtanh.f32 %v2983_v58 }
0x1588   :  { %v4411_v59 = vpop.eup %4410 }
0x1589   :  { %2812 = vrot.lane.b32.xlu1 %v4411_v59, %s4528_s26 }
0x1590   :  { %v4413_v60 = vpop.eup %4412 }
0x1591   :  { %2987 = vrot.lane.b32.xlu0 %v4413_v60, %s4528_s26 }
0x15fb   :  { %v2813_v62 = vpop.permute.xlu1 %2812 }
0x15fc   :  { %v2815_v0 = vmul.f32 %v2813_v62, %v2810_v61 }
0x15fe   :  { %v2817_v1 = vadd.f32 %v2816_v63, %v2815_v0 }
0x1600   :  { %3074 = vrot.lane.b32.xlu1 %v2817_v1, %s4528_s26 }
0x1603   :  { %v2988_v5 = vpop.permute.xlu0 %2987 }
0x1604   :  { %v2990_v7 = vmul.f32 %v2988_v5, %v2985_v2 }
0x1606   :  { %v2992_v8 = vadd.f32 %v2991_v6, %v2990_v7 }
0x1608   :  { %2994 = vrot.lane.b32.xlu0 %v2992_v8, %s4528_s26 }
0x1672   :  { %v3075_v10 = vpop.permute.xlu1 %3074 }
0x1673   :  { %3326 = vst.msk [vmem:[#allocation9] sm:$0xff] %vm83_vm0, %v3075_v10  ;;  %4069 = vmatmul.mubr.msk.f32.vlgmr.msra.gmra.mrb[38].mxu0 %vm83_vm0, %v3075_v10 }
0x1674   :  { %4305 = vmatpush3.bf16.msra.mxu0 %v4848_v34  ;;  %4090 = vmatprep.mubr.msk.f32.mxu0 %vm4524_vm1, %v4525_v24 }
0x1675   :  { %4306 = vmatprep.subr.bf16.mxu0 %v4523_v15 }
0x1678   :  { %4308 = vmatpush3.bf16.msra.mxu0 %v4855_v41 }
0x167a   :  { %v2995_v3 = vpop.permute.xlu0 %2994 }
0x167b   :  { %4058 = vmatmul.mubr.msk.f32.vlgmr.msra.gmra.mrb[34].mxu1 %vm83_vm0, %v2995_v3 }
0x167c   :  { %4299 = vmatpush3.bf16.msra.mxu1 %v5143_v12  ;;  %4079 = vmatprep.mubr.msk.f32.mxu1 %vm4524_vm1, %v4525_v24 }
0x167d   :  { %4300 = vmatprep.subr.bf16.mxu1 %v4523_v15 }
0x1680   :  { %4302 = vmatpush3.bf16.msra.mxu1 %v5089_v33 }
0x1683   :  { %4080 = vmatmul.mubr.msk.f32.vlgmr.msra.gmra.mrb[36].mxu1 %vm83_vm0, %v2995_v3 }
0x1746   :  { %v3144_v34 = vpop.f32.mrb[38].mxu0 }
0x1747   :  { %v4070_v9 = vpop.f32.mrb[39].mxu0  ;;  %v3145_v24 = vadd.f32 %v5189_v51, %v3144_v34 }
0x174e   :  { %v3064_v11 = vpop.f32.mrb[34].mxu1 }
0x174f   :  { %v3065_v16 = vadd.f32 %v4901_v57, %v3064_v11  ;;  %v4059_v41 = vpop.f32.mrb[35].mxu1 }
0x1751   :  { %3068 = vst [vmem:[#allocation8 + $0x30] sm:$0xff] %v3065_v16 }
0x1756   :  { %v3218_v18 = vpop.f32.mrb[36].mxu1 }
0x1757   :  { %v3229_v21 = vadd.f32 %v3218_v18, %v4829_v55  ;;  %v4081_v12 = vpop.f32.mrb[37].mxu1  ;;  %v3222_v15 = vadd.f32 %v3218_v18, %v3145_v24 }
0x1759   :  { %3231 = vrot.lane.b32.xlu0 %v3229_v21, %s4526_s17  ;;  %v3503_v22 = vmul.f32 -1.442695, %v3222_v15 }
0x175b   :  { %4414 = vpow2.f32 %v3503_v22 }
0x1765   :  { %v4415_v33 = vpop.eup %4414 }
0x1766   :  { %v3226_v23 = vadd.f32 1.0, %v4415_v33 }
0x1768   :  { %4416 = vrcp.f32 %v3226_v23 }
0x1772   :  { %v4417_v25 = vpop.eup %4416 }
0x1773   :  { %v3241_v36 = vsub.f32 1.0, %v4417_v25  ;;  %v3247_v31 = vmul.f32 %v4417_v25, %v2992_v8 }
0x17cb   :  { %v3232_v26 = vpop.permute.xlu0 %3231 }
0x17cc   :  { %v3234_v30 = vmul.f32 %v4417_v25, %v3232_v26 }
0x17ce   :  { %3236 = vrot.lane.b32.xlu1 %v3234_v30, %s4526_s17  ;;  %s3345_s17 = sshll.u32 %s4529_s5, 4  ;;  %s3346_s17 = int_to_ptr.vmem [resolvable:$true] %s3345_s17 }
0x17cf   :  { %s4466_s2 = scalar_lea.vmem %s3346_s17, 256  ;;  %p4471_p3 = scmp.lt.s32.totalorder %s3346_s17, %s3346_s17 }
0x17d0   :  { %p4467_p2 = scmp.ne.s32.totalorder %s3346_s17, %s4466_s2  ;;  %p4472_p4 = scmp.lt.s32.totalorder %s4466_s2, %s4466_s2 }
0x17d2   :  { %p4473_p5 = por %p4472_p4, %p4471_p3 }
0x17d4   :  { %p4474_p6 = pnand %p4473_p5, %p4467_p2 }
0x1840   :  { %v3237_v57 = vpop.permute.xlu1 %3236 }
0x1841   :  { %v3239_v32 = vadd.f32 %v3237_v57, %v3145_v24 }
0x1843   :  { %4418 = vtanh.f32 %v3239_v32 }
0x184d   :  { %v4419_v55 = vpop.eup %4418 }
0x184e   :  { %3243 = vrot.lane.b32.xlu0 %v4419_v55, %s4528_s26 }
0x18c0   :  { %v3244_v27 = vpop.permute.xlu0 %3243 }
0x18c1   :  { %v3246_v35 = vmul.f32 %v3244_v27, %v3241_v36 }
0x18c3   :  { %v3248_v14 = vadd.f32 %v3247_v31, %v3246_v35 }
0x18c5   :  { %3250 = vrot.lane.b32.xlu1 %v3248_v14, %s4528_s26 }
0x1937   :  { %v3251_v17 = vpop.permute.xlu1 %3250 }
0x1938   :  { %3329 = vst.msk [vmem:[#allocation9 + $0x8] sm:$0xff] %vm83_vm0, %v3251_v17  ;;  %4091 = vmatmul.mubr.msk.f32.vlgmr.msra.gmra.mrb[40].mxu0 %vm83_vm0, %v3251_v17 }
0x1939   :  { %4477 = shalt.err (!%p4474_p6)
}
0x193a   :  { %s4478_s19 = scalar_lea.hbm %s5263_s10, 256 }
0x193b   :  { %p4479_p7 = scmp.ne.s32.totalorder %s5263_s10, %s4478_s19  ;;  %p4482_p8 = scmp.lt.u32.totalorder %s4478_s19, %s5263_s10 }
0x193d   :  { %p4484_p9 = pnand %p4482_p8, %p4479_p7 }
0x193f   :  { %4487 = shalt.err (!%p4484_p9)
}
0x1940   :  { %3351 = dma.vmem_to_hbm [thread:$0]  %s3346_s17, 256, %s5263_s10, [#allocation10], %s4519_s23, %s4519_s23, %s4520_s24  }
0x1941   :  { %s4530_s27 = smov [#allocation8]   ;;  %v4421_v42 = vld [vmem:[%s5261_s8] ss:$0 sm:$0xff] }
0x1942   :  { %s3336_s28 = sshll.u32 %s4530_s27, 4  ;;  %s3337_s28 = int_to_ptr.vmem [resolvable:$true] %s3336_s28 }
0x1943   :  { %s4488_s11 = scalar_lea.vmem %s3337_s28, 1024  ;;  %p4493_p11 = scmp.lt.s32.totalorder %s3337_s28, %s3337_s28 }
0x1944   :  { %p4489_p10 = scmp.ne.s32.totalorder %s3337_s28, %s4488_s11  ;;  %p4494_p12 = scmp.lt.s32.totalorder %s4488_s11, %s4488_s11 }
0x1946   :  { %p4495_p13 = por %p4494_p12, %p4493_p11 }
0x1948   :  { %p4496_p0 = pnand %p4495_p13, %p4489_p10 }
0x1a0b   :  { %v3320_v38 = vpop.f32.mrb[40].mxu0 }
0x1a0c   :  { %v3321_v29 = vadd.f32 %v4421_v42, %v3320_v38  ;;  %v4092_v39 = vpop.f32.mrb[41].mxu0 }
0x1a0e   :  { %3324 = vst [vmem:[#allocation8 + $0x38] sm:$0xff] %v3321_v29 }
0x1a0f   :  { %4499 = shalt.err (!%p4496_p0)
}
0x1a10   :  { %s4500_s23 = scalar_lea.hbm %s5262_s9, 1024 }
0x1a11   :  { %p4501_p1 = scmp.ne.s32.totalorder %s5262_s9, %s4500_s23  ;;  %p4504_p2 = scmp.lt.u32.totalorder %s4500_s23, %s5262_s9 }
0x1a13   :  { %p4506_p3 = pnand %p4504_p2, %p4501_p1 }
0x1a15   :  { %4509 = shalt.err (!%p4506_p3)
}
0x1a16   :  { %3339 = dma.vmem_to_hbm [thread:$0]  %s3337_s28, 1024, %s5262_s9, [#allocation5]  }
0x1a17   :  { %4514 = dma.done.wait [#allocation5], 1024  }
0x1a18   :  { %4515 = vsyncadd [#allocation5], 4294966272 }
0x1a19   :  { %4516 = dma.done.wait [#allocation10], 256  }
0x1a1a   :  { %4517 = vsyncadd [#allocation10], 4294967040 }
0x1a1b   :  { %3358 = vsyncpa [#allocation4], 1 }
0x1a1c   :  { %3359 = vsyncpa [#allocation7], 1 }
0x1a1d   :  { %3360 = vsyncpa [#allocation5], 1 }
0x1a1e   :  { %3361 = vsyncpa [#allocation10], 1 }

</bundles_post_ra>
